<compile_context>
chip_gen: v6e
topology: v6e:2x2x1
jax: 0.10.0
libtpu: 0.0.40
codegen_flags: <defaults>
</compile_context>

<pallas_src>
import functools

import jax
import jax.numpy as jnp
from jax.experimental import pallas as pl
from jax.experimental.pallas import tpu as pltpu

# ---------------------------------------------------------------------------
# Constants implied by the module.
# ---------------------------------------------------------------------------
PLAYER_TOKEN_LENGTH = 6
WEAPON_TOKEN_LENGTH = 4
NUM_WEAPON_TOKENS = 3
ACTION_DIM = 5
STATE_SPLIT = (ACTION_DIM, PLAYER_TOKEN_LENGTH,
               NUM_WEAPON_TOKENS * WEAPON_TOKEN_LENGTH)      # (5, 6, 12)
HALF_STATE = sum(STATE_SPLIT)                                # 23
STATE_DIM = 2 * HALF_STATE                                   # 46

EMBED_DIM = 10
NUM_HEADS = 2
HEAD_DIM = EMBED_DIM // NUM_HEADS                            # 5
NUM_PLAYER_TOKENS = 2
NUM_KV_TOKENS = NUM_PLAYER_TOKENS + 2 * NUM_WEAPON_TOKENS    # 8
OUT_DIM = NUM_PLAYER_TOKENS * EMBED_DIM                      # 20

# Fused-projection row layout.
#   K section : row = h*40 + d*8 + j        (j on sublanes, 8-aligned groups)
#   Q section : row = 80 + h*10 + i*5 + d   (single rows; 1/sqrt(hd) folded)
#   (4 zero pad rows -> K+Q = 104, keeps the V' section 8-aligned)
#   V' section: row = 104 + h*128 + j*16 + e (e on sublanes, 16-row groups,
#                                             W_o folded per head)
K_ROWS = NUM_HEADS * HEAD_DIM * NUM_KV_TOKENS                # 80
Q_ROWS = NUM_HEADS * NUM_PLAYER_TOKENS * HEAD_DIM            # 20
KQ_ROWS = 104
KQ_PAD = KQ_ROWS - K_ROWS - Q_ROWS                           # 4
Q_BASE = K_ROWS                                              # 80
V_BASE = KQ_ROWS                                             # 104
V_GROUP = 16
V_ROWS = NUM_HEADS * NUM_KV_TOKENS * V_GROUP                 # 256
R_TOTAL = KQ_ROWS + V_ROWS                                   # 360

_CHUNK = 512                                                 # in-kernel lane chunk


# ---------------------------------------------------------------------------
# Pallas kernel: per-chunk fused matmul + attention, batch on lanes.
# ---------------------------------------------------------------------------
def _analyzer_kernel(x_ref, w_ref, b_ref, out_ref):
    # x_ref  : (TN, 46)   raw states (natural layout)
    # w_ref  : (360, 46)  fused projection weights  [K | Q | V'] sections
    # b_ref  : (360, 1)   fused biases (flags, b_q/k/v, b_o/2, 1/sqrt(hd) folded)
    # out_ref: (TN, 20)   per-row [query0(10) | query1(10)] output
    tn = x_ref.shape[0]
    w = w_ref[...]
    b = b_ref[...]

    for c0 in range(0, tn, _CHUNK):                 # static Python loop (unrolled)
        cs = min(_CHUNK, tn - c0)
        x_c = x_ref[c0:c0 + cs, :]                  # (cs, 46)

        # One MXU matmul per chunk: contract dim 1 of both operands (RHS is
        # consumed transposed) -> (360, cs), batch on lanes.
        y = jax.lax.dot_general(
            w, x_c,
            dimension_numbers=(((1,), (1,)), ((), ())),
            preferred_element_type=jnp.float32) + b            # (360, cs)

        o = [None] * NUM_PLAYER_TOKENS              # per-query (16, cs) accumulators
        for h in range(NUM_HEADS):
            k_base = h * HEAD_DIM * NUM_KV_TOKENS
            v_base = V_BASE + h * NUM_KV_TOKENS * V_GROUP
            for i in range(NUM_PLAYER_TOKENS):
                q_base = Q_BASE + (h * NUM_PLAYER_TOKENS + i) * HEAD_DIM

                # scores[j, n] = sum_d q[d, n] * k[j, d, n]  (scale pre-folded)
                s = None
                for d in range(HEAD_DIM):           # 5 real dims only, no padding
                    k_slab = y[k_base + d * NUM_KV_TOKENS:
                               k_base + (d + 1) * NUM_KV_TOKENS]      # (8, cs)
                    q_row = y[q_base + d:q_base + d + 1]              # (1, cs)
                    t = q_row * k_slab                                # (8, cs)
                    s = t if s is None else s + t

                # softmax over the key-token axis (sublanes); recip on the EUP.
                m = jnp.max(s, axis=0, keepdims=True)                 # (1, cs)
                ex = jnp.exp(s - m)                                   # (8, cs)
                l = jnp.sum(ex, axis=0, keepdims=True)                # (1, cs)
                a = ex * pl.reciprocal(l, approx=True)                # (8, cs)

                # out[e, n] += sum_j a[j, n] * v'[e, j, n]
                for j in range(NUM_KV_TOKENS):
                    v_slab = y[v_base + j * V_GROUP:
                               v_base + (j + 1) * V_GROUP]            # (16, cs)
                    t = a[j:j + 1] * v_slab                           # (16, cs)
                    o[i] = t if o[i] is None else o[i] + t

        # Tiny fully-aligned (16, cs) -> (cs, 16) transposes; write the (n, 20)
        # output layout directly (no wrapper-side transpose pass).
        for i in range(NUM_PLAYER_TOKENS):
            o_t = o[i].T                                              # (cs, 16)
            out_ref[c0:c0 + cs, i * EMBED_DIM:(i + 1) * EMBED_DIM] = (
                o_t[:, :EMBED_DIM].astype(out_ref.dtype))


# ---------------------------------------------------------------------------
# Host-side (traced, tiny) fusion of all weights into one resident block.
# ---------------------------------------------------------------------------
def _pack_weights(params):
    f32 = jnp.float32
    pw = params['pw'].astype(f32); pb = params['pb'].reshape(-1).astype(f32)
    ww = params['ww'].astype(f32); wb = params['wb'].reshape(-1).astype(f32)
    wq = params['wq'].astype(f32); bq = params['bq'].reshape(-1).astype(f32)
    wk = params['wk'].astype(f32); bk = params['bk'].reshape(-1).astype(f32)
    wv = params['wv'].astype(f32); bv = params['bv'].reshape(-1).astype(f32)
    wo = params['wo'].astype(f32); bo = params['bo'].reshape(-1).astype(f32)

    a0 = STATE_SPLIT[0]            # 5
    a1 = a0 + STATE_SPLIT[1]       # 11

    # Per-token affine map from the raw 46-d state: e_t = state @ P_t + c_t.
    # Hero/adversary flag columns are folded into c_t (flag * last weight row).
    # Token order matches the reference kv: [hero_p, adv_p, hero_w0..2, adv_w0..2].
    P_list, c_list = [], []

    def add(offset, width, w_full, b_full, flag):
        m = jnp.zeros((STATE_DIM, EMBED_DIM), f32)
        m = m.at[offset:offset + width].set(w_full[:width])
        P_list.append(m)
        c_list.append(b_full + flag * w_full[width])

    add(a0, PLAYER_TOKEN_LENGTH, pw, pb, 1.0)                       # hero player
    add(HALF_STATE + a0, PLAYER_TOKEN_LENGTH, pw, pb, 0.0)          # adversary player
    for j in range(NUM_WEAPON_TOKENS):
        add(a1 + j * WEAPON_TOKEN_LENGTH, WEAPON_TOKEN_LENGTH, ww, wb, 1.0)
    for j in range(NUM_WEAPON_TOKENS):
        add(HALF_STATE + a1 + j * WEAPON_TOKEN_LENGTH, WEAPON_TOKEN_LENGTH, ww, wb, 0.0)
    P = jnp.stack(P_list)          # (8, 46, E)
    c = jnp.stack(c_list)          # (8, E)

    # ---- K section: rows (h, d, j) -----------------------------------------
    Wk_tok = jnp.einsum('tse,ef->tsf', P, wk)                       # (8, 46, E)
    bk_tok = c @ wk + bk                                            # (8, E)
    kw = Wk_tok.transpose(2, 0, 1).reshape(
        NUM_HEADS, HEAD_DIM, NUM_KV_TOKENS, STATE_DIM)              # [h][d][j][s]
    kw_rows = kw.reshape(K_ROWS, STATE_DIM)
    kb_rows = bk_tok.T.reshape(NUM_HEADS, HEAD_DIM, NUM_KV_TOKENS).reshape(K_ROWS)

    # ---- Q section (1/sqrt(head_dim) folded): rows (h, i, d) ---------------
    scale = 1.0 / (HEAD_DIM ** 0.5)
    Wq_tok = jnp.einsum('tse,ef->tsf', P[:NUM_PLAYER_TOKENS], wq) * scale   # (2, 46, E)
    bq_tok = (c[:NUM_PLAYER_TOKENS] @ wq + bq) * scale                      # (2, E)
    qw = Wq_tok.transpose(2, 0, 1).reshape(
        NUM_HEADS, HEAD_DIM, NUM_PLAYER_TOKENS, STATE_DIM)          # [h][d][i][s]
    qw_rows = qw.transpose(0, 2, 1, 3).reshape(Q_ROWS, STATE_DIM)   # [h][i][d]
    qb_rows = bq_tok.T.reshape(NUM_HEADS, HEAD_DIM, NUM_PLAYER_TOKENS)
    qb_rows = qb_rows.transpose(0, 2, 1).reshape(Q_ROWS)

    kq_w = jnp.concatenate(
        [kw_rows, qw_rows, jnp.zeros((KQ_PAD, STATE_DIM), f32)], axis=0)    # (104, 46)
    kq_b = jnp.concatenate([kb_rows, qb_rows, jnp.zeros((KQ_PAD,), f32)], axis=0)

    # ---- V' section (W_o folded per head, + b_o / NUM_HEADS): rows (h, j, e)
    # Exact because each head's attention weights sum to 1 over all 8 KV tokens.
    Wv_tok = jnp.einsum('tse,ef->tsf', P, wv)                       # (8, 46, E)
    bv_tok = c @ wv + bv                                            # (8, E)
    vw_list, vb_list = [], []
    for h in range(NUM_HEADS):
        wo_h = wo[h * HEAD_DIM:(h + 1) * HEAD_DIM]                  # (5, E)
        vw_h = jnp.einsum('tsd,de->tse',
                          Wv_tok[..., h * HEAD_DIM:(h + 1) * HEAD_DIM], wo_h)  # (8, 46, E)
        vb_h = bv_tok[:, h * HEAD_DIM:(h + 1) * HEAD_DIM] @ wo_h + bo / NUM_HEADS  # (8, E)
        vw_h = jnp.pad(vw_h.transpose(0, 2, 1),
                       ((0, 0), (0, V_GROUP - EMBED_DIM), (0, 0)))  # (8, 16, 46)
        vb_h = jnp.pad(vb_h, ((0, 0), (0, V_GROUP - EMBED_DIM)))    # (8, 16)
        vw_list.append(vw_h.reshape(NUM_KV_TOKENS * V_GROUP, STATE_DIM))
        vb_list.append(vb_h.reshape(NUM_KV_TOKENS * V_GROUP))
    v_w = jnp.concatenate(vw_list, axis=0)                          # (256, 46)
    v_b = jnp.concatenate(vb_list, axis=0)

    w_big = jnp.concatenate([kq_w, v_w], axis=0)                    # (360, 46)
    b_big = jnp.concatenate([kq_b, v_b], axis=0).reshape(R_TOTAL, 1)
    return w_big, b_big


# ---------------------------------------------------------------------------
# Wrapper: batch grid over natural-layout states, resident weights.
# ---------------------------------------------------------------------------
def _round_up(x, m):
    return ((x + m - 1) // m) * m


@functools.partial(jax.jit, static_argnames=("tile_n_max",))
def unconditional_analyzer(states, params, *, tile_n_max=2048):
    assert states.ndim == 2 and states.shape[1] == STATE_DIM
    n = states.shape[0]

    n_min = _round_up(max(n, 1), 128)
    if n_min <= 128:
        tile_n = n_min
    else:
        # >= 2 grid steps where the batch allows it (v7x dual-TC occupancy),
        # capped for bounded VMEM / per-step DMA size.
        tile_n = max(128, min(tile_n_max, _round_up(n_min // 2, 128)))
    n_pad = _round_up(n, tile_n)
    grid = (n_pad // tile_n,)

    w_big, b_big = _pack_weights(params)

    x = states.astype(jnp.float32)
    if n_pad != n:
        x = jnp.pad(x, ((0, n_pad - n), (0, 0)))    # zero rows -> finite garbage, sliced off

    flops_per_elem = (2 * R_TOTAL * STATE_DIM
                      + NUM_HEADS * NUM_PLAYER_TOKENS * NUM_KV_TOKENS
                      * (2 * HEAD_DIM + 4 + 2 * EMBED_DIM))
    cost = pl.CostEstimate(
        flops=n_pad * flops_per_elem,
        transcendentals=n_pad * NUM_HEADS * NUM_PLAYER_TOKENS * NUM_KV_TOKENS,
        bytes_accessed=4 * (n_pad * STATE_DIM + n_pad * OUT_DIM
                            + R_TOTAL * (STATE_DIM + 1)),
    )

    out = pl.pallas_call(
        _analyzer_kernel,
        out_shape=jax.ShapeDtypeStruct((n_pad, OUT_DIM), jnp.float32),
        grid=grid,
        in_specs=[
            pl.BlockSpec((tile_n, STATE_DIM), lambda i: (i, 0)),
            # Weights/bias: constant index_map -> DMA'd once, resident in VMEM.
            pl.BlockSpec((R_TOTAL, STATE_DIM), lambda i: (0, 0)),
            pl.BlockSpec((R_TOTAL, 1), lambda i: (0, 0)),
        ],
        out_specs=pl.BlockSpec((tile_n, OUT_DIM), lambda i: (i, 0)),
        compiler_params=pltpu.CompilerParams(
            dimension_semantics=("parallel",),
            vmem_limit_bytes=32 * 1024 * 1024),
        cost_estimate=cost,
    )(x, w_big, b_big)

    return out[:n]


# ---------------------------------------------------------------------------
# Deterministic parameter init (synthetic weights, Linear-style uniform init).
# ---------------------------------------------------------------------------
def init_params(key):
    def linear(k, d_in, d_out):
        kw, kb = jax.random.split(k)
        bound = 1.0 / (d_in ** 0.5)
        w = jax.random.uniform(kw, (d_in, d_out), jnp.float32, -bound, bound)
        b = jax.random.uniform(kb, (1, d_out), jnp.float32, -bound, bound)
        return w, b

    ks = jax.random.split(key, 6)
    pw, pb = linear(ks[0], PLAYER_TOKEN_LENGTH + 1, EMBED_DIM)
    ww, wb = linear(ks[1], WEAPON_TOKEN_LENGTH + 1, EMBED_DIM)
    wq, bq = linear(ks[2], EMBED_DIM, EMBED_DIM)
    wk, bk = linear(ks[3], EMBED_DIM, EMBED_DIM)
    wv, bv = linear(ks[4], EMBED_DIM, EMBED_DIM)
    wo, bo = linear(ks[5], EMBED_DIM, EMBED_DIM)
    return dict(pw=pw, pb=pb, ww=ww, wb=wb,
                wq=wq, bq=bq, wk=wk, bk=bk, wv=wv, bv=bv, wo=wo, bo=bo)


# ---------------------------------------------------------------------------
# Pure-JAX reference (for correctness check only) — unfused formulation.
# ---------------------------------------------------------------------------
def _build_tokens(states):
    n = states.shape[0]
    hero, adversary = states[:, :HALF_STATE], states[:, HALF_STATE:]
    a0 = STATE_SPLIT[0]
    a1 = a0 + STATE_SPLIT[1]

    hero_tok = hero[:, a0:a1]
    hero_wt = hero[:, a1:].reshape(n, NUM_WEAPON_TOKENS, WEAPON_TOKEN_LENGTH)
    adv_tok = adversary[:, a0:a1]
    adv_wt = adversary[:, a1:].reshape(n, NUM_WEAPON_TOKENS, WEAPON_TOKEN_LENGTH)

    ones1 = jnp.ones((n, 1), states.dtype)
    zeros1 = jnp.zeros((n, 1), states.dtype)
    hero_tok = jnp.concatenate([hero_tok, ones1], axis=1)
    adv_tok = jnp.concatenate([adv_tok, zeros1], axis=1)

    ones2 = jnp.ones((n, NUM_WEAPON_TOKENS, 1), states.dtype)
    zeros2 = jnp.zeros((n, NUM_WEAPON_TOKENS, 1), states.dtype)
    hero_wt = jnp.concatenate([hero_wt, ones2], axis=2)
    adv_wt = jnp.concatenate([adv_wt, zeros2], axis=2)

    player_tokens = jnp.stack([hero_tok, adv_tok], axis=1)          # (n, 2, 7)
    weapon_tokens = jnp.concatenate([hero_wt, adv_wt], axis=1)      # (n, 6, 5)
    return player_tokens, weapon_tokens


def ref_forward(states, params):
    n = states.shape[0]
    ptok, wtok = _build_tokens(states)
    pp = ptok @ params['pw'] + params['pb'][None]
    wp = wtok @ params['ww'] + params['wb'][None]
    kv = jnp.concatenate([pp, wp], axis=1)
    q = pp @ params['wq'] + params['bq'][None]
    k = kv @ params['wk'] + params['bk'][None]
    v = kv @ params['wv'] + params['bv'][None]

    def split_heads(x):
        return x.reshape(x.shape[0], x.shape[1], NUM_HEADS, HEAD_DIM).transpose(0, 2, 1, 3)

    qh, kh, vh = split_heads(q), split_heads(k), split_heads(v)
    s = jnp.einsum('nhqd,nhkd->nhqk', qh, kh) / (HEAD_DIM ** 0.5)
    a = jax.nn.softmax(s, axis=-1)
    ctx = jnp.einsum('nhqk,nhkd->nhqd', a, vh)
    ctx = ctx.transpose(0, 2, 1, 3).reshape(n, NUM_PLAYER_TOKENS, EMBED_DIM)
    out = ctx @ params['wo'] + params['bo'][None]
    return out.reshape(n, -1)


if __name__ == "__main__":
    key = jax.random.PRNGKey(0)
    k_x, k_p = jax.random.split(key)
    params = init_params(k_p)

    # n=2: single 128-lane tile; n=700: two 384-lane tiles (multi-step grid with
    # padded tail); n=5000: three 2048-lane tiles exercising the tile cap and
    # the resident-weight constant index_map.
    for n in (2, 700, 5000):
        kx = jax.random.fold_in(k_x, n)
        states = jax.random.normal(kx, (n, STATE_DIM), jnp.float32)

        out = jax.block_until_ready(unconditional_analyzer(states, params))
        assert out.shape == (n, OUT_DIM)

        ref = ref_forward(states, params)
        if not jnp.allclose(out, ref, atol=2e-2, rtol=2e-2):
            err = float(jnp.max(jnp.abs(out - ref)))
            raise AssertionError(
                f"Pallas kernel output does not match JAX reference (max err {err})")

    print("KERNEL_OK")
</pallas_src>

<mosaic_0001>
module attributes {stable_mosaic.version = 11 : i64} {
  func.func @_analyzer_kernel(%arg0: i32, %arg1: memref<128x46xf32, #tpu.memory_space<vmem>>, %arg2: memref<360x46xf32, #tpu.memory_space<vmem>>, %arg3: memref<360x1xf32, #tpu.memory_space<vmem>>, %arg4: memref<128x20xf32, #tpu.memory_space<vmem>>) attributes {dimension_semantics = [#tpu.dimension_semantics<parallel>], iteration_bounds = array<i64: 1>, scalar_prefetch = 0 : i64, scratch_operands = 0 : i64, tpu.core_type = #tpu.core_type<tc>, window_params = [{transform_indices = @transform_0, window_bounds = array<i64: 128, 46>}, {pipeline_mode = #tpu.pipeline_mode<synchronous>, transform_indices = @transform_1, window_bounds = array<i64: 360, 46>}, {pipeline_mode = #tpu.pipeline_mode<synchronous>, transform_indices = @transform_2, window_bounds = array<i64: 360, 1>}, {transform_indices = @transform_3, window_bounds = array<i64: 128, 20>}]} {
    %c0 = arith.constant 0 : index
    %c0_0 = arith.constant 0 : index
    %0 = vector.load %arg2[%c0, %c0_0] : memref<360x46xf32, #tpu.memory_space<vmem>>, vector<360x46xf32>
    %c0_1 = arith.constant 0 : index
    %c0_2 = arith.constant 0 : index
    %1 = vector.load %arg3[%c0_1, %c0_2] : memref<360x1xf32, #tpu.memory_space<vmem>>, vector<360x1xf32>
    %c0_3 = arith.constant 0 : index
    %c0_4 = arith.constant 0 : index
    %2 = vector.load %arg1[%c0_3, %c0_4] : memref<128x46xf32, #tpu.memory_space<vmem>>, vector<128x46xf32>
    %cst = arith.constant dense<0.000000e+00> : vector<360x128xf32>
    %3 = tpu.matmul %0, %2, %cst {dimension_numbers = #tpu.dot_dimension_numbers<[1], [1], [0], [0], [0, 0, 1, 0], [], []>} : vector<360x46xf32>, vector<128x46xf32>, vector<360x128xf32> -> vector<360x128xf32>
    %4 = vector.broadcast %1 : vector<360x1xf32> to vector<360x128xf32>
    %5 = arith.addf %3, %4 : vector<360x128xf32>
    %6 = vector.extract_strided_slice %5 {offsets = [0, 0], sizes = [8, 128], strides = [1, 1]} : vector<360x128xf32> to vector<8x128xf32>
    %7 = vector.extract_strided_slice %5 {offsets = [80, 0], sizes = [1, 128], strides = [1, 1]} : vector<360x128xf32> to vector<1x128xf32>
    %8 = vector.broadcast %7 : vector<1x128xf32> to vector<8x128xf32>
    %9 = arith.mulf %8, %6 : vector<8x128xf32>
    %10 = vector.extract_strided_slice %5 {offsets = [8, 0], sizes = [8, 128], strides = [1, 1]} : vector<360x128xf32> to vector<8x128xf32>
    %11 = vector.extract_strided_slice %5 {offsets = [81, 0], sizes = [1, 128], strides = [1, 1]} : vector<360x128xf32> to vector<1x128xf32>
    %12 = vector.broadcast %11 : vector<1x128xf32> to vector<8x128xf32>
    %13 = arith.mulf %12, %10 : vector<8x128xf32>
    %14 = arith.addf %9, %13 : vector<8x128xf32>
    %15 = vector.extract_strided_slice %5 {offsets = [16, 0], sizes = [8, 128], strides = [1, 1]} : vector<360x128xf32> to vector<8x128xf32>
    %16 = vector.extract_strided_slice %5 {offsets = [82, 0], sizes = [1, 128], strides = [1, 1]} : vector<360x128xf32> to vector<1x128xf32>
    %17 = vector.broadcast %16 : vector<1x128xf32> to vector<8x128xf32>
    %18 = arith.mulf %17, %15 : vector<8x128xf32>
    %19 = arith.addf %14, %18 : vector<8x128xf32>
    %20 = vector.extract_strided_slice %5 {offsets = [24, 0], sizes = [8, 128], strides = [1, 1]} : vector<360x128xf32> to vector<8x128xf32>
    %21 = vector.extract_strided_slice %5 {offsets = [83, 0], sizes = [1, 128], strides = [1, 1]} : vector<360x128xf32> to vector<1x128xf32>
    %22 = vector.broadcast %21 : vector<1x128xf32> to vector<8x128xf32>
    %23 = arith.mulf %22, %20 : vector<8x128xf32>
    %24 = arith.addf %19, %23 : vector<8x128xf32>
    %25 = vector.extract_strided_slice %5 {offsets = [32, 0], sizes = [8, 128], strides = [1, 1]} : vector<360x128xf32> to vector<8x128xf32>
    %26 = vector.extract_strided_slice %5 {offsets = [84, 0], sizes = [1, 128], strides = [1, 1]} : vector<360x128xf32> to vector<1x128xf32>
    %27 = vector.broadcast %26 : vector<1x128xf32> to vector<8x128xf32>
    %28 = arith.mulf %27, %25 : vector<8x128xf32>
    %29 = arith.addf %24, %28 : vector<8x128xf32>
    %cst_5 = arith.constant dense<0xFF800000> : vector<128xf32>
    %30 = vector.multi_reduction <maximumf>, %29, %cst_5 [0] : vector<8x128xf32> to vector<128xf32>
    %31 = vector.shape_cast %30 : vector<128xf32> to vector<1x128xf32>
    %32 = vector.broadcast %31 : vector<1x128xf32> to vector<8x128xf32>
    %33 = arith.subf %29, %32 : vector<8x128xf32>
    %34 = math.exp %33 : vector<8x128xf32>
    %cst_6 = arith.constant dense<0.000000e+00> : vector<128xf32>
    %35 = vector.multi_reduction <add>, %34, %cst_6 [0] : vector<8x128xf32> to vector<128xf32>
    %36 = vector.shape_cast %35 : vector<128xf32> to vector<1x128xf32>
    %37 = tpu.reciprocal %36 {approx = true} : vector<1x128xf32> -> vector<1x128xf32>
    %38 = vector.broadcast %37 : vector<1x128xf32> to vector<8x128xf32>
    %39 = arith.mulf %34, %38 : vector<8x128xf32>
    %40 = vector.extract_strided_slice %5 {offsets = [104, 0], sizes = [16, 128], strides = [1, 1]} : vector<360x128xf32> to vector<16x128xf32>
    %41 = vector.extract_strided_slice %39 {offsets = [0, 0], sizes = [1, 128], strides = [1, 1]} : vector<8x128xf32> to vector<1x128xf32>
    %42 = vector.broadcast %41 : vector<1x128xf32> to vector<16x128xf32>
    %43 = arith.mulf %42, %40 : vector<16x128xf32>
    %44 = vector.extract_strided_slice %5 {offsets = [120, 0], sizes = [16, 128], strides = [1, 1]} : vector<360x128xf32> to vector<16x128xf32>
    %45 = vector.extract_strided_slice %39 {offsets = [1, 0], sizes = [1, 128], strides = [1, 1]} : vector<8x128xf32> to vector<1x128xf32>
    %46 = vector.broadcast %45 : vector<1x128xf32> to vector<16x128xf32>
    %47 = arith.mulf %46, %44 : vector<16x128xf32>
    %48 = arith.addf %43, %47 : vector<16x128xf32>
    %49 = vector.extract_strided_slice %5 {offsets = [136, 0], sizes = [16, 128], strides = [1, 1]} : vector<360x128xf32> to vector<16x128xf32>
    %50 = vector.extract_strided_slice %39 {offsets = [2, 0], sizes = [1, 128], strides = [1, 1]} : vector<8x128xf32> to vector<1x128xf32>
    %51 = vector.broadcast %50 : vector<1x128xf32> to vector<16x128xf32>
    %52 = arith.mulf %51, %49 : vector<16x128xf32>
    %53 = arith.addf %48, %52 : vector<16x128xf32>
    %54 = vector.extract_strided_slice %5 {offsets = [152, 0], sizes = [16, 128], strides = [1, 1]} : vector<360x128xf32> to vector<16x128xf32>
    %55 = vector.extract_strided_slice %39 {offsets = [3, 0], sizes = [1, 128], strides = [1, 1]} : vector<8x128xf32> to vector<1x128xf32>
    %56 = vector.broadcast %55 : vector<1x128xf32> to vector<16x128xf32>
    %57 = arith.mulf %56, %54 : vector<16x128xf32>
    %58 = arith.addf %53, %57 : vector<16x128xf32>
    %59 = vector.extract_strided_slice %5 {offsets = [168, 0], sizes = [16, 128], strides = [1, 1]} : vector<360x128xf32> to vector<16x128xf32>
    %60 = vector.extract_strided_slice %39 {offsets = [4, 0], sizes = [1, 128], strides = [1, 1]} : vector<8x128xf32> to vector<1x128xf32>
    %61 = vector.broadcast %60 : vector<1x128xf32> to vector<16x128xf32>
    %62 = arith.mulf %61, %59 : vector<16x128xf32>
    %63 = arith.addf %58, %62 : vector<16x128xf32>
    %64 = vector.extract_strided_slice %5 {offsets = [184, 0], sizes = [16, 128], strides = [1, 1]} : vector<360x128xf32> to vector<16x128xf32>
    %65 = vector.extract_strided_slice %39 {offsets = [5, 0], sizes = [1, 128], strides = [1, 1]} : vector<8x128xf32> to vector<1x128xf32>
    %66 = vector.broadcast %65 : vector<1x128xf32> to vector<16x128xf32>
    %67 = arith.mulf %66, %64 : vector<16x128xf32>
    %68 = arith.addf %63, %67 : vector<16x128xf32>
    %69 = vector.extract_strided_slice %5 {offsets = [200, 0], sizes = [16, 128], strides = [1, 1]} : vector<360x128xf32> to vector<16x128xf32>
    %70 = vector.extract_strided_slice %39 {offsets = [6, 0], sizes = [1, 128], strides = [1, 1]} : vector<8x128xf32> to vector<1x128xf32>
    %71 = vector.broadcast %70 : vector<1x128xf32> to vector<16x128xf32>
    %72 = arith.mulf %71, %69 : vector<16x128xf32>
    %73 = arith.addf %68, %72 : vector<16x128xf32>
    %74 = vector.extract_strided_slice %5 {offsets = [216, 0], sizes = [16, 128], strides = [1, 1]} : vector<360x128xf32> to vector<16x128xf32>
    %75 = vector.extract_strided_slice %39 {offsets = [7, 0], sizes = [1, 128], strides = [1, 1]} : vector<8x128xf32> to vector<1x128xf32>
    %76 = vector.broadcast %75 : vector<1x128xf32> to vector<16x128xf32>
    %77 = arith.mulf %76, %74 : vector<16x128xf32>
    %78 = arith.addf %73, %77 : vector<16x128xf32>
    %79 = vector.extract_strided_slice %5 {offsets = [0, 0], sizes = [8, 128], strides = [1, 1]} : vector<360x128xf32> to vector<8x128xf32>
    %80 = vector.extract_strided_slice %5 {offsets = [85, 0], sizes = [1, 128], strides = [1, 1]} : vector<360x128xf32> to vector<1x128xf32>
    %81 = vector.broadcast %80 : vector<1x128xf32> to vector<8x128xf32>
    %82 = arith.mulf %81, %79 : vector<8x128xf32>
    %83 = vector.extract_strided_slice %5 {offsets = [8, 0], sizes = [8, 128], strides = [1, 1]} : vector<360x128xf32> to vector<8x128xf32>
    %84 = vector.extract_strided_slice %5 {offsets = [86, 0], sizes = [1, 128], strides = [1, 1]} : vector<360x128xf32> to vector<1x128xf32>
    %85 = vector.broadcast %84 : vector<1x128xf32> to vector<8x128xf32>
    %86 = arith.mulf %85, %83 : vector<8x128xf32>
    %87 = arith.addf %82, %86 : vector<8x128xf32>
    %88 = vector.extract_strided_slice %5 {offsets = [16, 0], sizes = [8, 128], strides = [1, 1]} : vector<360x128xf32> to vector<8x128xf32>
    %89 = vector.extract_strided_slice %5 {offsets = [87, 0], sizes = [1, 128], strides = [1, 1]} : vector<360x128xf32> to vector<1x128xf32>
    %90 = vector.broadcast %89 : vector<1x128xf32> to vector<8x128xf32>
    %91 = arith.mulf %90, %88 : vector<8x128xf32>
    %92 = arith.addf %87, %91 : vector<8x128xf32>
    %93 = vector.extract_strided_slice %5 {offsets = [24, 0], sizes = [8, 128], strides = [1, 1]} : vector<360x128xf32> to vector<8x128xf32>
    %94 = vector.extract_strided_slice %5 {offsets = [88, 0], sizes = [1, 128], strides = [1, 1]} : vector<360x128xf32> to vector<1x128xf32>
    %95 = vector.broadcast %94 : vector<1x128xf32> to vector<8x128xf32>
    %96 = arith.mulf %95, %93 : vector<8x128xf32>
    %97 = arith.addf %92, %96 : vector<8x128xf32>
    %98 = vector.extract_strided_slice %5 {offsets = [32, 0], sizes = [8, 128], strides = [1, 1]} : vector<360x128xf32> to vector<8x128xf32>
    %99 = vector.extract_strided_slice %5 {offsets = [89, 0], sizes = [1, 128], strides = [1, 1]} : vector<360x128xf32> to vector<1x128xf32>
    %100 = vector.broadcast %99 : vector<1x128xf32> to vector<8x128xf32>
    %101 = arith.mulf %100, %98 : vector<8x128xf32>
    %102 = arith.addf %97, %101 : vector<8x128xf32>
    %cst_7 = arith.constant dense<0xFF800000> : vector<128xf32>
    %103 = vector.multi_reduction <maximumf>, %102, %cst_7 [0] : vector<8x128xf32> to vector<128xf32>
    %104 = vector.shape_cast %103 : vector<128xf32> to vector<1x128xf32>
    %105 = vector.broadcast %104 : vector<1x128xf32> to vector<8x128xf32>
    %106 = arith.subf %102, %105 : vector<8x128xf32>
    %107 = math.exp %106 : vector<8x128xf32>
    %cst_8 = arith.constant dense<0.000000e+00> : vector<128xf32>
    %108 = vector.multi_reduction <add>, %107, %cst_8 [0] : vector<8x128xf32> to vector<128xf32>
    %109 = vector.shape_cast %108 : vector<128xf32> to vector<1x128xf32>
    %110 = tpu.reciprocal %109 {approx = true} : vector<1x128xf32> -> vector<1x128xf32>
    %111 = vector.broadcast %110 : vector<1x128xf32> to vector<8x128xf32>
    %112 = arith.mulf %107, %111 : vector<8x128xf32>
    %113 = vector.extract_strided_slice %5 {offsets = [104, 0], sizes = [16, 128], strides = [1, 1]} : vector<360x128xf32> to vector<16x128xf32>
    %114 = vector.extract_strided_slice %112 {offsets = [0, 0], sizes = [1, 128], strides = [1, 1]} : vector<8x128xf32> to vector<1x128xf32>
    %115 = vector.broadcast %114 : vector<1x128xf32> to vector<16x128xf32>
    %116 = arith.mulf %115, %113 : vector<16x128xf32>
    %117 = vector.extract_strided_slice %5 {offsets = [120, 0], sizes = [16, 128], strides = [1, 1]} : vector<360x128xf32> to vector<16x128xf32>
    %118 = vector.extract_strided_slice %112 {offsets = [1, 0], sizes = [1, 128], strides = [1, 1]} : vector<8x128xf32> to vector<1x128xf32>
    %119 = vector.broadcast %118 : vector<1x128xf32> to vector<16x128xf32>
    %120 = arith.mulf %119, %117 : vector<16x128xf32>
    %121 = arith.addf %116, %120 : vector<16x128xf32>
    %122 = vector.extract_strided_slice %5 {offsets = [136, 0], sizes = [16, 128], strides = [1, 1]} : vector<360x128xf32> to vector<16x128xf32>
    %123 = vector.extract_strided_slice %112 {offsets = [2, 0], sizes = [1, 128], strides = [1, 1]} : vector<8x128xf32> to vector<1x128xf32>
    %124 = vector.broadcast %123 : vector<1x128xf32> to vector<16x128xf32>
    %125 = arith.mulf %124, %122 : vector<16x128xf32>
    %126 = arith.addf %121, %125 : vector<16x128xf32>
    %127 = vector.extract_strided_slice %5 {offsets = [152, 0], sizes = [16, 128], strides = [1, 1]} : vector<360x128xf32> to vector<16x128xf32>
    %128 = vector.extract_strided_slice %112 {offsets = [3, 0], sizes = [1, 128], strides = [1, 1]} : vector<8x128xf32> to vector<1x128xf32>
    %129 = vector.broadcast %128 : vector<1x128xf32> to vector<16x128xf32>
    %130 = arith.mulf %129, %127 : vector<16x128xf32>
    %131 = arith.addf %126, %130 : vector<16x128xf32>
    %132 = vector.extract_strided_slice %5 {offsets = [168, 0], sizes = [16, 128], strides = [1, 1]} : vector<360x128xf32> to vector<16x128xf32>
    %133 = vector.extract_strided_slice %112 {offsets = [4, 0], sizes = [1, 128], strides = [1, 1]} : vector<8x128xf32> to vector<1x128xf32>
    %134 = vector.broadcast %133 : vector<1x128xf32> to vector<16x128xf32>
    %135 = arith.mulf %134, %132 : vector<16x128xf32>
    %136 = arith.addf %131, %135 : vector<16x128xf32>
    %137 = vector.extract_strided_slice %5 {offsets = [184, 0], sizes = [16, 128], strides = [1, 1]} : vector<360x128xf32> to vector<16x128xf32>
    %138 = vector.extract_strided_slice %112 {offsets = [5, 0], sizes = [1, 128], strides = [1, 1]} : vector<8x128xf32> to vector<1x128xf32>
    %139 = vector.broadcast %138 : vector<1x128xf32> to vector<16x128xf32>
    %140 = arith.mulf %139, %137 : vector<16x128xf32>
    %141 = arith.addf %136, %140 : vector<16x128xf32>
    %142 = vector.extract_strided_slice %5 {offsets = [200, 0], sizes = [16, 128], strides = [1, 1]} : vector<360x128xf32> to vector<16x128xf32>
    %143 = vector.extract_strided_slice %112 {offsets = [6, 0], sizes = [1, 128], strides = [1, 1]} : vector<8x128xf32> to vector<1x128xf32>
    %144 = vector.broadcast %143 : vector<1x128xf32> to vector<16x128xf32>
    %145 = arith.mulf %144, %142 : vector<16x128xf32>
    %146 = arith.addf %141, %145 : vector<16x128xf32>
    %147 = vector.extract_strided_slice %5 {offsets = [216, 0], sizes = [16, 128], strides = [1, 1]} : vector<360x128xf32> to vector<16x128xf32>
    %148 = vector.extract_strided_slice %112 {offsets = [7, 0], sizes = [1, 128], strides = [1, 1]} : vector<8x128xf32> to vector<1x128xf32>
    %149 = vector.broadcast %148 : vector<1x128xf32> to vector<16x128xf32>
    %150 = arith.mulf %149, %147 : vector<16x128xf32>
    %151 = arith.addf %146, %150 : vector<16x128xf32>
    %152 = vector.extract_strided_slice %5 {offsets = [40, 0], sizes = [8, 128], strides = [1, 1]} : vector<360x128xf32> to vector<8x128xf32>
    %153 = vector.extract_strided_slice %5 {offsets = [90, 0], sizes = [1, 128], strides = [1, 1]} : vector<360x128xf32> to vector<1x128xf32>
    %154 = vector.broadcast %153 : vector<1x128xf32> to vector<8x128xf32>
    %155 = arith.mulf %154, %152 : vector<8x128xf32>
    %156 = vector.extract_strided_slice %5 {offsets = [48, 0], sizes = [8, 128], strides = [1, 1]} : vector<360x128xf32> to vector<8x128xf32>
    %157 = vector.extract_strided_slice %5 {offsets = [91, 0], sizes = [1, 128], strides = [1, 1]} : vector<360x128xf32> to vector<1x128xf32>
    %158 = vector.broadcast %157 : vector<1x128xf32> to vector<8x128xf32>
    %159 = arith.mulf %158, %156 : vector<8x128xf32>
    %160 = arith.addf %155, %159 : vector<8x128xf32>
    %161 = vector.extract_strided_slice %5 {offsets = [56, 0], sizes = [8, 128], strides = [1, 1]} : vector<360x128xf32> to vector<8x128xf32>
    %162 = vector.extract_strided_slice %5 {offsets = [92, 0], sizes = [1, 128], strides = [1, 1]} : vector<360x128xf32> to vector<1x128xf32>
    %163 = vector.broadcast %162 : vector<1x128xf32> to vector<8x128xf32>
    %164 = arith.mulf %163, %161 : vector<8x128xf32>
    %165 = arith.addf %160, %164 : vector<8x128xf32>
    %166 = vector.extract_strided_slice %5 {offsets = [64, 0], sizes = [8, 128], strides = [1, 1]} : vector<360x128xf32> to vector<8x128xf32>
    %167 = vector.extract_strided_slice %5 {offsets = [93, 0], sizes = [1, 128], strides = [1, 1]} : vector<360x128xf32> to vector<1x128xf32>
    %168 = vector.broadcast %167 : vector<1x128xf32> to vector<8x128xf32>
    %169 = arith.mulf %168, %166 : vector<8x128xf32>
    %170 = arith.addf %165, %169 : vector<8x128xf32>
    %171 = vector.extract_strided_slice %5 {offsets = [72, 0], sizes = [8, 128], strides = [1, 1]} : vector<360x128xf32> to vector<8x128xf32>
    %172 = vector.extract_strided_slice %5 {offsets = [94, 0], sizes = [1, 128], strides = [1, 1]} : vector<360x128xf32> to vector<1x128xf32>
    %173 = vector.broadcast %172 : vector<1x128xf32> to vector<8x128xf32>
    %174 = arith.mulf %173, %171 : vector<8x128xf32>
    %175 = arith.addf %170, %174 : vector<8x128xf32>
    %cst_9 = arith.constant dense<0xFF800000> : vector<128xf32>
    %176 = vector.multi_reduction <maximumf>, %175, %cst_9 [0] : vector<8x128xf32> to vector<128xf32>
    %177 = vector.shape_cast %176 : vector<128xf32> to vector<1x128xf32>
    %178 = vector.broadcast %177 : vector<1x128xf32> to vector<8x128xf32>
    %179 = arith.subf %175, %178 : vector<8x128xf32>
    %180 = math.exp %179 : vector<8x128xf32>
    %cst_10 = arith.constant dense<0.000000e+00> : vector<128xf32>
    %181 = vector.multi_reduction <add>, %180, %cst_10 [0] : vector<8x128xf32> to vector<128xf32>
    %182 = vector.shape_cast %181 : vector<128xf32> to vector<1x128xf32>
    %183 = tpu.reciprocal %182 {approx = true} : vector<1x128xf32> -> vector<1x128xf32>
    %184 = vector.broadcast %183 : vector<1x128xf32> to vector<8x128xf32>
    %185 = arith.mulf %180, %184 : vector<8x128xf32>
    %186 = vector.extract_strided_slice %5 {offsets = [232, 0], sizes = [16, 128], strides = [1, 1]} : vector<360x128xf32> to vector<16x128xf32>
    %187 = vector.extract_strided_slice %185 {offsets = [0, 0], sizes = [1, 128], strides = [1, 1]} : vector<8x128xf32> to vector<1x128xf32>
    %188 = vector.broadcast %187 : vector<1x128xf32> to vector<16x128xf32>
    %189 = arith.mulf %188, %186 : vector<16x128xf32>
    %190 = arith.addf %78, %189 : vector<16x128xf32>
    %191 = vector.extract_strided_slice %5 {offsets = [248, 0], sizes = [16, 128], strides = [1, 1]} : vector<360x128xf32> to vector<16x128xf32>
    %192 = vector.extract_strided_slice %185 {offsets = [1, 0], sizes = [1, 128], strides = [1, 1]} : vector<8x128xf32> to vector<1x128xf32>
    %193 = vector.broadcast %192 : vector<1x128xf32> to vector<16x128xf32>
    %194 = arith.mulf %193, %191 : vector<16x128xf32>
    %195 = arith.addf %190, %194 : vector<16x128xf32>
    %196 = vector.extract_strided_slice %5 {offsets = [264, 0], sizes = [16, 128], strides = [1, 1]} : vector<360x128xf32> to vector<16x128xf32>
    %197 = vector.extract_strided_slice %185 {offsets = [2, 0], sizes = [1, 128], strides = [1, 1]} : vector<8x128xf32> to vector<1x128xf32>
    %198 = vector.broadcast %197 : vector<1x128xf32> to vector<16x128xf32>
    %199 = arith.mulf %198, %196 : vector<16x128xf32>
    %200 = arith.addf %195, %199 : vector<16x128xf32>
    %201 = vector.extract_strided_slice %5 {offsets = [280, 0], sizes = [16, 128], strides = [1, 1]} : vector<360x128xf32> to vector<16x128xf32>
    %202 = vector.extract_strided_slice %185 {offsets = [3, 0], sizes = [1, 128], strides = [1, 1]} : vector<8x128xf32> to vector<1x128xf32>
    %203 = vector.broadcast %202 : vector<1x128xf32> to vector<16x128xf32>
    %204 = arith.mulf %203, %201 : vector<16x128xf32>
    %205 = arith.addf %200, %204 : vector<16x128xf32>
    %206 = vector.extract_strided_slice %5 {offsets = [296, 0], sizes = [16, 128], strides = [1, 1]} : vector<360x128xf32> to vector<16x128xf32>
    %207 = vector.extract_strided_slice %185 {offsets = [4, 0], sizes = [1, 128], strides = [1, 1]} : vector<8x128xf32> to vector<1x128xf32>
    %208 = vector.broadcast %207 : vector<1x128xf32> to vector<16x128xf32>
    %209 = arith.mulf %208, %206 : vector<16x128xf32>
    %210 = arith.addf %205, %209 : vector<16x128xf32>
    %211 = vector.extract_strided_slice %5 {offsets = [312, 0], sizes = [16, 128], strides = [1, 1]} : vector<360x128xf32> to vector<16x128xf32>
    %212 = vector.extract_strided_slice %185 {offsets = [5, 0], sizes = [1, 128], strides = [1, 1]} : vector<8x128xf32> to vector<1x128xf32>
    %213 = vector.broadcast %212 : vector<1x128xf32> to vector<16x128xf32>
    %214 = arith.mulf %213, %211 : vector<16x128xf32>
    %215 = arith.addf %210, %214 : vector<16x128xf32>
    %216 = vector.extract_strided_slice %5 {offsets = [328, 0], sizes = [16, 128], strides = [1, 1]} : vector<360x128xf32> to vector<16x128xf32>
    %217 = vector.extract_strided_slice %185 {offsets = [6, 0], sizes = [1, 128], strides = [1, 1]} : vector<8x128xf32> to vector<1x128xf32>
    %218 = vector.broadcast %217 : vector<1x128xf32> to vector<16x128xf32>
    %219 = arith.mulf %218, %216 : vector<16x128xf32>
    %220 = arith.addf %215, %219 : vector<16x128xf32>
    %221 = vector.extract_strided_slice %5 {offsets = [344, 0], sizes = [16, 128], strides = [1, 1]} : vector<360x128xf32> to vector<16x128xf32>
    %222 = vector.extract_strided_slice %185 {offsets = [7, 0], sizes = [1, 128], strides = [1, 1]} : vector<8x128xf32> to vector<1x128xf32>
    %223 = vector.broadcast %222 : vector<1x128xf32> to vector<16x128xf32>
    %224 = arith.mulf %223, %221 : vector<16x128xf32>
    %225 = arith.addf %220, %224 : vector<16x128xf32>
    %226 = vector.extract_strided_slice %5 {offsets = [40, 0], sizes = [8, 128], strides = [1, 1]} : vector<360x128xf32> to vector<8x128xf32>
    %227 = vector.extract_strided_slice %5 {offsets = [95, 0], sizes = [1, 128], strides = [1, 1]} : vector<360x128xf32> to vector<1x128xf32>
    %228 = vector.broadcast %227 : vector<1x128xf32> to vector<8x128xf32>
    %229 = arith.mulf %228, %226 : vector<8x128xf32>
    %230 = vector.extract_strided_slice %5 {offsets = [48, 0], sizes = [8, 128], strides = [1, 1]} : vector<360x128xf32> to vector<8x128xf32>
    %231 = vector.extract_strided_slice %5 {offsets = [96, 0], sizes = [1, 128], strides = [1, 1]} : vector<360x128xf32> to vector<1x128xf32>
    %232 = vector.broadcast %231 : vector<1x128xf32> to vector<8x128xf32>
    %233 = arith.mulf %232, %230 : vector<8x128xf32>
    %234 = arith.addf %229, %233 : vector<8x128xf32>
    %235 = vector.extract_strided_slice %5 {offsets = [56, 0], sizes = [8, 128], strides = [1, 1]} : vector<360x128xf32> to vector<8x128xf32>
    %236 = vector.extract_strided_slice %5 {offsets = [97, 0], sizes = [1, 128], strides = [1, 1]} : vector<360x128xf32> to vector<1x128xf32>
    %237 = vector.broadcast %236 : vector<1x128xf32> to vector<8x128xf32>
    %238 = arith.mulf %237, %235 : vector<8x128xf32>
    %239 = arith.addf %234, %238 : vector<8x128xf32>
    %240 = vector.extract_strided_slice %5 {offsets = [64, 0], sizes = [8, 128], strides = [1, 1]} : vector<360x128xf32> to vector<8x128xf32>
    %241 = vector.extract_strided_slice %5 {offsets = [98, 0], sizes = [1, 128], strides = [1, 1]} : vector<360x128xf32> to vector<1x128xf32>
    %242 = vector.broadcast %241 : vector<1x128xf32> to vector<8x128xf32>
    %243 = arith.mulf %242, %240 : vector<8x128xf32>
    %244 = arith.addf %239, %243 : vector<8x128xf32>
    %245 = vector.extract_strided_slice %5 {offsets = [72, 0], sizes = [8, 128], strides = [1, 1]} : vector<360x128xf32> to vector<8x128xf32>
    %246 = vector.extract_strided_slice %5 {offsets = [99, 0], sizes = [1, 128], strides = [1, 1]} : vector<360x128xf32> to vector<1x128xf32>
    %247 = vector.broadcast %246 : vector<1x128xf32> to vector<8x128xf32>
    %248 = arith.mulf %247, %245 : vector<8x128xf32>
    %249 = arith.addf %244, %248 : vector<8x128xf32>
    %cst_11 = arith.constant dense<0xFF800000> : vector<128xf32>
    %250 = vector.multi_reduction <maximumf>, %249, %cst_11 [0] : vector<8x128xf32> to vector<128xf32>
    %251 = vector.shape_cast %250 : vector<128xf32> to vector<1x128xf32>
    %252 = vector.broadcast %251 : vector<1x128xf32> to vector<8x128xf32>
    %253 = arith.subf %249, %252 : vector<8x128xf32>
    %254 = math.exp %253 : vector<8x128xf32>
    %cst_12 = arith.constant dense<0.000000e+00> : vector<128xf32>
    %255 = vector.multi_reduction <add>, %254, %cst_12 [0] : vector<8x128xf32> to vector<128xf32>
    %256 = vector.shape_cast %255 : vector<128xf32> to vector<1x128xf32>
    %257 = tpu.reciprocal %256 {approx = true} : vector<1x128xf32> -> vector<1x128xf32>
    %258 = vector.broadcast %257 : vector<1x128xf32> to vector<8x128xf32>
    %259 = arith.mulf %254, %258 : vector<8x128xf32>
    %260 = vector.extract_strided_slice %5 {offsets = [232, 0], sizes = [16, 128], strides = [1, 1]} : vector<360x128xf32> to vector<16x128xf32>
    %261 = vector.extract_strided_slice %259 {offsets = [0, 0], sizes = [1, 128], strides = [1, 1]} : vector<8x128xf32> to vector<1x128xf32>
    %262 = vector.broadcast %261 : vector<1x128xf32> to vector<16x128xf32>
    %263 = arith.mulf %262, %260 : vector<16x128xf32>
    %264 = arith.addf %151, %263 : vector<16x128xf32>
    %265 = vector.extract_strided_slice %5 {offsets = [248, 0], sizes = [16, 128], strides = [1, 1]} : vector<360x128xf32> to vector<16x128xf32>
    %266 = vector.extract_strided_slice %259 {offsets = [1, 0], sizes = [1, 128], strides = [1, 1]} : vector<8x128xf32> to vector<1x128xf32>
    %267 = vector.broadcast %266 : vector<1x128xf32> to vector<16x128xf32>
    %268 = arith.mulf %267, %265 : vector<16x128xf32>
    %269 = arith.addf %264, %268 : vector<16x128xf32>
    %270 = vector.extract_strided_slice %5 {offsets = [264, 0], sizes = [16, 128], strides = [1, 1]} : vector<360x128xf32> to vector<16x128xf32>
    %271 = vector.extract_strided_slice %259 {offsets = [2, 0], sizes = [1, 128], strides = [1, 1]} : vector<8x128xf32> to vector<1x128xf32>
    %272 = vector.broadcast %271 : vector<1x128xf32> to vector<16x128xf32>
    %273 = arith.mulf %272, %270 : vector<16x128xf32>
    %274 = arith.addf %269, %273 : vector<16x128xf32>
    %275 = vector.extract_strided_slice %5 {offsets = [280, 0], sizes = [16, 128], strides = [1, 1]} : vector<360x128xf32> to vector<16x128xf32>
    %276 = vector.extract_strided_slice %259 {offsets = [3, 0], sizes = [1, 128], strides = [1, 1]} : vector<8x128xf32> to vector<1x128xf32>
    %277 = vector.broadcast %276 : vector<1x128xf32> to vector<16x128xf32>
    %278 = arith.mulf %277, %275 : vector<16x128xf32>
    %279 = arith.addf %274, %278 : vector<16x128xf32>
    %280 = vector.extract_strided_slice %5 {offsets = [296, 0], sizes = [16, 128], strides = [1, 1]} : vector<360x128xf32> to vector<16x128xf32>
    %281 = vector.extract_strided_slice %259 {offsets = [4, 0], sizes = [1, 128], strides = [1, 1]} : vector<8x128xf32> to vector<1x128xf32>
    %282 = vector.broadcast %281 : vector<1x128xf32> to vector<16x128xf32>
    %283 = arith.mulf %282, %280 : vector<16x128xf32>
    %284 = arith.addf %279, %283 : vector<16x128xf32>
    %285 = vector.extract_strided_slice %5 {offsets = [312, 0], sizes = [16, 128], strides = [1, 1]} : vector<360x128xf32> to vector<16x128xf32>
    %286 = vector.extract_strided_slice %259 {offsets = [5, 0], sizes = [1, 128], strides = [1, 1]} : vector<8x128xf32> to vector<1x128xf32>
    %287 = vector.broadcast %286 : vector<1x128xf32> to vector<16x128xf32>
    %288 = arith.mulf %287, %285 : vector<16x128xf32>
    %289 = arith.addf %284, %288 : vector<16x128xf32>
    %290 = vector.extract_strided_slice %5 {offsets = [328, 0], sizes = [16, 128], strides = [1, 1]} : vector<360x128xf32> to vector<16x128xf32>
    %291 = vector.extract_strided_slice %259 {offsets = [6, 0], sizes = [1, 128], strides = [1, 1]} : vector<8x128xf32> to vector<1x128xf32>
    %292 = vector.broadcast %291 : vector<1x128xf32> to vector<16x128xf32>
    %293 = arith.mulf %292, %290 : vector<16x128xf32>
    %294 = arith.addf %289, %293 : vector<16x128xf32>
    %295 = vector.extract_strided_slice %5 {offsets = [344, 0], sizes = [16, 128], strides = [1, 1]} : vector<360x128xf32> to vector<16x128xf32>
    %296 = vector.extract_strided_slice %259 {offsets = [7, 0], sizes = [1, 128], strides = [1, 1]} : vector<8x128xf32> to vector<1x128xf32>
    %297 = vector.broadcast %296 : vector<1x128xf32> to vector<16x128xf32>
    %298 = arith.mulf %297, %295 : vector<16x128xf32>
    %299 = arith.addf %294, %298 : vector<16x128xf32>
    %300 = tpu.transpose %225, [1, 0] : vector<16x128xf32> -> vector<128x16xf32>
    %301 = vector.extract_strided_slice %300 {offsets = [0, 0], sizes = [128, 10], strides = [1, 1]} : vector<128x16xf32> to vector<128x10xf32>
    %c0_13 = arith.constant 0 : index
    %c0_14 = arith.constant 0 : index
    %302 = vector.load %arg4[%c0_13, %c0_14] : memref<128x20xf32, #tpu.memory_space<vmem>>, vector<128x10xf32>
    tpu.vector_store %arg4[%c0_13, %c0_14], %301 {strides = array<i32>} : memref<128x20xf32, #tpu.memory_space<vmem>>, vector<128x10xf32>,
    %303 = tpu.transpose %299, [1, 0] : vector<16x128xf32> -> vector<128x16xf32>
    %304 = vector.extract_strided_slice %303 {offsets = [0, 0], sizes = [128, 10], strides = [1, 1]} : vector<128x16xf32> to vector<128x10xf32>
    %c0_15 = arith.constant 0 : index
    %c10 = arith.constant 10 : index
    %305 = vector.load %arg4[%c0_15, %c10] : memref<128x20xf32, #tpu.memory_space<vmem>>, vector<128x10xf32>
    tpu.vector_store %arg4[%c0_15, %c10], %304 {strides = array<i32>} : memref<128x20xf32, #tpu.memory_space<vmem>>, vector<128x10xf32>,
    return
  }
  func.func @transform_0(%arg0: i32) -> (i32, i32) {
    %c0_i32 = arith.constant 0 : i32
    %c0_i32_0 = arith.constant 0 : i32
    return %arg0, %c0_i32 : i32, i32
  }
  func.func @transform_1(%arg0: i32) -> (i32, i32) {
    %c0_i32 = arith.constant 0 : i32
    %c0_i32_0 = arith.constant 0 : i32
    %c0_i32_1 = arith.constant 0 : i32
    return %c0_i32, %c0_i32_0 : i32, i32
  }
  func.func @transform_2(%arg0: i32) -> (i32, i32) {
    %c0_i32 = arith.constant 0 : i32
    %c0_i32_0 = arith.constant 0 : i32
    %c0_i32_1 = arith.constant 0 : i32
    return %c0_i32, %c0_i32_0 : i32, i32
  }
  func.func @transform_3(%arg0: i32) -> (i32, i32) {
    %c0_i32 = arith.constant 0 : i32
    %c0_i32_0 = arith.constant 0 : i32
    return %arg0, %c0_i32 : i32, i32
  }
}

</mosaic_0001>

<bundles_post_ra>
// kernel: unconditional_analyzer.1
= control target key start
LH: loop header
LB: loop body
LE: loop exit
PB: predicated region body
PF: predicated region fallthrough
CT: control target
= control target key end

     0   :  { %vm345_vm0 = vcmask 375808   ;;  %v1764_v0 = vmov 0.0   ;;  %vm1765_vm1 = vmmov 0   ;;  %v1766_v3 = vmov 0   ;;  %s1767_s29 = smov 10   ;;  %s2890_s0 = inlined_call_operand.vmem [shape: f32[128,46], index: 0, kind: input, shape index: {}]   ;;  %s2891_s2 = inlined_call_operand.vmem [shape: f32[360,1], index: 2, kind: input, shape index: {}]   ;;  %s2892_s1 = inlined_call_operand.vmem [shape: f32[360,46], index: 1, kind: input, shape index: {}]   ;;  %s2893_s3 = inlined_call_operand.vmem [shape: f32[128,20], index: 3, kind: output, shape index: {}]  }
   0x1   :  { %1543 = vmatprep.subr.mxu0 %v1764_v0  ;;  %1710 = vmatprep.subr.mxu1 %v1764_v0  ;;  %v119_v1 = vld [vmem:[%s2890_s0 + $0x78] sm:$0xff]  ;;  %v118_v2 = vld [vmem:[%s2890_s0 + $0x70] sm:$0xff]  ;;  %v117_v4 = vld [vmem:[%s2890_s0 + $0x68] sm:$0xff]  ;;  %vm1287_vm2 = vcmask 80896   ;;  %vm1400_vm3 = vcmask 162896  }
   0x2   :  { %1544 = vmatpush3.xpose.msk.msra.mxu0 %vm345_vm0, %v119_v1  ;;  %1726 = vmatpush3.xpose.msk.msra.mxu1 %vm345_vm0, %v119_v1  ;;  %v59_v5 = vld [vmem:[%s2891_s2] sm:$0xff]  ;;  %v61_v7 = vld [vmem:[%s2891_s2 + $0x10] sm:$0xff]  ;;  %v60_v8 = vld [vmem:[%s2891_s2 + $0x8] sm:$0xff] }
   0x3   :  { %1545 = vmatprep.subr.mxu0 %v1764_v0  ;;  %1711 = vmatprep.subr.mxu1 %v1764_v0  ;;  %v116_v6 = vld [vmem:[%s2890_s0 + $0x60] sm:$0xff]  ;;  %v62_v9 = vld [vmem:[%s2891_s2 + $0x18] sm:$0xff]  ;;  %v69_v11 = vld [vmem:[%s2891_s2 + $0x50] sm:$0xff] }
   0x4   :  { %1575 = vmatprep.mubr.msk.f32.mxu0 %vm1765_vm1, %v1764_v0  ;;  %1644 = vmatprep.mubr.msk.f32.mxu1 %vm1765_vm1, %v1764_v0  ;;  %v115_v10 = vld [vmem:[%s2890_s0 + $0x58] sm:$0xff]  ;;  %v114_v13 = vld [vmem:[%s2890_s0 + $0x50] sm:$0xff]  ;;  %v63_v14 = vld [vmem:[%s2891_s2 + $0x20] sm:$0xff] }
   0x5   :  { %1746 = vset.pattern.permute.xlu0 %v1766_v3  ;;  %1747 = vset.pattern.permute.xlu1 %v1766_v3  ;;  %v70_v12 = vld [vmem:[%s2891_s2 + $0x58] sm:$0xff]  ;;  %v64_v15 = vld [vmem:[%s2891_s2 + $0x28] sm:$0xff]  ;;  %v71_v17 = vld [vmem:[%s2891_s2 + $0x60] sm:$0xff] }
   0x6   :  { %1546 = vmatpush3.xpose.msk.msra.mxu0 %vm345_vm0, %v118_v2  ;;  %1727 = vmatpush3.xpose.msk.msra.mxu1 %vm345_vm0, %v118_v2  ;;  %v113_v16 = vld [vmem:[%s2890_s0 + $0x48] sm:$0xff]  ;;  %v65_v18 = vld [vmem:[%s2891_s2 + $0x30] sm:$0xff]  ;;  %v112_v19 = vld [vmem:[%s2890_s0 + $0x40] sm:$0xff] }
   0x7   :  { %1547 = vmatprep.subr.mxu0 %v1764_v0  ;;  %1712 = vmatprep.subr.mxu1 %v1764_v0  ;;  %v66_v20 = vld [vmem:[%s2891_s2 + $0x38] sm:$0xff]  ;;  %v67_v21 = vld [vmem:[%s2891_s2 + $0x40] sm:$0xff]  ;;  %v68_v23 = vld [vmem:[%s2891_s2 + $0x48] sm:$0xff] }
   0x8   :  { %122 = vperm.xlu0 %1746, %v59_v5   ;;  %132 = vperm.xlu1 %1747, %v61_v7   ;;  %v111_v22 = vld [vmem:[%s2890_s0 + $0x38] sm:$0xff]  ;;  %v72_v24 = vld [vmem:[%s2891_s2 + $0x68] sm:$0xff]  ;;  %v110_v25 = vld [vmem:[%s2890_s0 + $0x30] sm:$0xff] }
   0x9   :  { %v73_v26 = vld [vmem:[%s2891_s2 + $0x70] sm:$0xff]  ;;  %v74_v27 = vld [vmem:[%s2891_s2 + $0x78] sm:$0xff]  ;;  %v109_v28 = vld [vmem:[%s2890_s0 + $0x28] sm:$0xff] }
   0xa   :  { %1548 = vmatpush3.xpose.msk.msra.mxu0 %vm345_vm0, %v117_v4  ;;  %1728 = vmatpush3.xpose.msk.msra.mxu1 %vm345_vm0, %v117_v4  ;;  %v75_v29 = vld [vmem:[%s2891_s2 + $0x80] sm:$0xff]  ;;  %v76_v30 = vld [vmem:[%s2891_s2 + $0x88] sm:$0xff]  ;;  %v77_v32 = vld [vmem:[%s2891_s2 + $0x90] sm:$0xff] }
   0xb   :  { %1549 = vmatprep.subr.mxu0 %v1764_v0  ;;  %1713 = vmatprep.subr.mxu1 %v1764_v0  ;;  %v108_v31 = vld [vmem:[%s2890_s0 + $0x20] sm:$0xff]  ;;  %v78_v33 = vld [vmem:[%s2891_s2 + $0x98] sm:$0xff]  ;;  %v80_v36 = vld [vmem:[%s2891_s2 + $0xa8] sm:$0xff] }
   0xc   :  { %127 = vperm.xlu0 %1746, %v60_v8   ;;  %137 = vperm.xlu1 %1747, %v62_v9   ;;  %v107_v34 = vld [vmem:[%s2890_s0 + $0x18] sm:$0xff]  ;;  %v79_v35 = vld [vmem:[%s2891_s2 + $0xa0] sm:$0xff]  ;;  %v106_v37 = vld [vmem:[%s2890_s0 + $0x10] sm:$0xff] }
   0xd   :  { %v81_v38 = vld [vmem:[%s2891_s2 + $0xb0] sm:$0xff]  ;;  %v82_v39 = vld [vmem:[%s2891_s2 + $0xb8] sm:$0xff]  ;;  %v105_v40 = vld [vmem:[%s2890_s0 + $0x8] sm:$0xff] }
   0xe   :  { %1550 = vmatpush3.xpose.msk.msra.mxu0 %vm345_vm0, %v116_v6  ;;  %1729 = vmatpush3.xpose.msk.msra.mxu1 %vm345_vm0, %v116_v6  ;;  %v83_v41 = vld [vmem:[%s2891_s2 + $0xc0] sm:$0xff]  ;;  %v84_v42 = vld [vmem:[%s2891_s2 + $0xc8] sm:$0xff]  ;;  %v85_v44 = vld [vmem:[%s2891_s2 + $0xd0] sm:$0xff] }
   0xf   :  { %1551 = vmatprep.subr.mxu0 %v1764_v0  ;;  %1714 = vmatprep.subr.mxu1 %v1764_v0  ;;  %v104_v43 = vld [vmem:[%s2890_s0] sm:$0xff]  ;;  %v86_v45 = vld [vmem:[%s2891_s2 + $0xd8] sm:$0xff]  ;;  %v88_v49 = vld [vmem:[%s2891_s2 + $0xe8] sm:$0xff] }
  0x10   :  { %172 = vperm.xlu0 %1746, %v69_v11   ;;  %177 = vperm.xlu1 %1747, %v70_v12   ;;  %v14_v46 = vld [vmem:[%s2892_s1] sm:$0xff]  ;;  %v37_v47 = vld [vmem:[%s2892_s1 + $0xb8] sm:$0xff]  ;;  %v15_v50 = vld [vmem:[%s2892_s1 + $0x8] sm:$0xff] }
  0x11   :  { %v87_v48 = vld [vmem:[%s2891_s2 + $0xe0] sm:$0xff]  ;;  %v89_v52 = vld [vmem:[%s2891_s2 + $0xf0] sm:$0xff]  ;;  %v90_v53 = vld [vmem:[%s2891_s2 + $0xf8] sm:$0xff] }
  0x12   :  { %1552 = vmatpush3.xpose.msk.msra.mxu0 %vm345_vm0, %v115_v10  ;;  %1730 = vmatpush3.xpose.msk.msra.mxu1 %vm345_vm0, %v115_v10  ;;  %v38_v51 = vld [vmem:[%s2892_s1 + $0xc0] sm:$0xff]  ;;  %v16_v54 = vld [vmem:[%s2892_s1 + $0x10] sm:$0xff]  ;;  %v39_v55 = vld [vmem:[%s2892_s1 + $0xc8] sm:$0xff] }
  0x13   :  { %1553 = vmatprep.subr.mxu0 %v1764_v0  ;;  %1715 = vmatprep.subr.mxu1 %v1764_v0  ;;  %v91_v56 = vld [vmem:[%s2891_s2 + $0x100] sm:$0xff]  ;;  %v92_v57 = vld [vmem:[%s2891_s2 + $0x108] sm:$0xff]  ;;  %v17_v58 = vld [vmem:[%s2892_s1 + $0x18] sm:$0xff] }
  0x14   :  { %142 = vperm.xlu0 %1746, %v63_v14   ;;  %147 = vperm.xlu1 %1747, %v64_v15   ;;  %v40_v59 = vld [vmem:[%s2892_s1 + $0xd0] sm:$0xff]  ;;  %v94_v61 = vld [vmem:[%s2891_s2 + $0x118] sm:$0xff]  ;;  %v18_v62 = vld [vmem:[%s2892_s1 + $0x20] sm:$0xff] }
  0x15   :  { %v93_v60 = vld [vmem:[%s2891_s2 + $0x110] sm:$0xff]  ;;  %v41_v63 = vld [vmem:[%s2892_s1 + $0xd8] sm:$0xff]  ;;  %v95_v1 = vld [vmem:[%s2891_s2 + $0x120] sm:$0xff] }
  0x16   :  { %1554 = vmatpush3.xpose.msk.msra.mxu0 %vm345_vm0, %v114_v13  ;;  %1731 = vmatpush3.xpose.msk.msra.mxu1 %vm345_vm0, %v114_v13  ;;  %v96_v2 = vld [vmem:[%s2891_s2 + $0x128] sm:$0xff]  ;;  %v42_v4 = vld [vmem:[%s2892_s1 + $0xe0] sm:$0xff]  ;;  %v97_v5 = vld [vmem:[%s2891_s2 + $0x130] sm:$0xff] }
  0x17   :  { %1555 = vmatprep.subr.mxu0 %v1764_v0  ;;  %1716 = vmatprep.subr.mxu1 %v1764_v0  ;;  %v19_v3 = vld [vmem:[%s2892_s1 + $0x28] sm:$0xff]  ;;  %v98_v6 = vld [vmem:[%s2891_s2 + $0x138] sm:$0xff]  ;;  %v20_v7 = vld [vmem:[%s2892_s1 + $0x30] sm:$0xff] }
  0x18   :  { %182 = vperm.xlu0 %1746, %v71_v17   ;;  %152 = vperm.xlu1 %1747, %v65_v18   ;;  %v43_v8 = vld [vmem:[%s2892_s1 + $0xe8] sm:$0xff]  ;;  %v99_v9 = vld [vmem:[%s2891_s2 + $0x140] sm:$0xff]  ;;  %v21_v11 = vld [vmem:[%s2892_s1 + $0x38] sm:$0xff] }
  0x19   :  { %v100_v10 = vld [vmem:[%s2891_s2 + $0x148] sm:$0xff]  ;;  %v44_v12 = vld [vmem:[%s2892_s1 + $0xf0] sm:$0xff]  ;;  %v102_v14 = vld [vmem:[%s2891_s2 + $0x158] sm:$0xff] }
  0x1a   :  { %1556 = vmatpush3.xpose.msk.msra.mxu0 %vm345_vm0, %v113_v16  ;;  %1732 = vmatpush3.xpose.msk.msra.mxu1 %vm345_vm0, %v113_v16  ;;  %v101_v13 = vld [vmem:[%s2891_s2 + $0x150] sm:$0xff]  ;;  %v22_v15 = vld [vmem:[%s2892_s1 + $0x40] sm:$0xff]  ;;  %v45_v16 = vld [vmem:[%s2892_s1 + $0xf8] sm:$0xff] }
  0x1b   :  { %1557 = vmatprep.subr.mxu0 %v1764_v0  ;;  %1717 = vmatprep.subr.mxu1 %v1764_v0  ;;  %v103_v17 = vld [vmem:[%s2891_s2 + $0x160] sm:$0xff]  ;;  %v23_v18 = vld [vmem:[%s2892_s1 + $0x48] sm:$0xff] }
  0x1c   :  { %157 = vperm.xlu0 %1746, %v66_v20   ;;  %162 = vperm.xlu1 %1747, %v67_v21   ;;  %v24_v20 = vld [vmem:[%s2892_s1 + $0x50] sm:$0xff]  ;;  %v47_v21 = vld [vmem:[%s2892_s1 + $0x108] sm:$0xff] }
  0x1e   :  { %1558 = vmatpush3.xpose.msk.msra.mxu0 %vm345_vm0, %v112_v19  ;;  %1733 = vmatpush3.xpose.msk.msra.mxu1 %vm345_vm0, %v112_v19  ;;  %v46_v19 = vld [vmem:[%s2892_s1 + $0x100] sm:$0xff] }
  0x1f   :  { %1559 = vmatprep.subr.mxu0 %v1764_v0  ;;  %1718 = vmatprep.subr.mxu1 %v1764_v0 }
  0x20   :  { %167 = vperm.xlu0 %1746, %v68_v23   ;;  %187 = vperm.xlu1 %1747, %v72_v24   ;;  %v48_v23 = vld [vmem:[%s2892_s1 + $0x110] sm:$0xff]  ;;  %v26_v24 = vld [vmem:[%s2892_s1 + $0x60] sm:$0xff] }
  0x22   :  { %1560 = vmatpush3.xpose.msk.msra.mxu0 %vm345_vm0, %v111_v22  ;;  %1734 = vmatpush3.xpose.msk.msra.mxu1 %vm345_vm0, %v111_v22  ;;  %v25_v22 = vld [vmem:[%s2892_s1 + $0x58] sm:$0xff] }
  0x23   :  { %1561 = vmatprep.subr.mxu0 %v1764_v0  ;;  %1719 = vmatprep.subr.mxu1 %v1764_v0 }
  0x24   :  { %192 = vperm.xlu0 %1746, %v73_v26   ;;  %197 = vperm.xlu1 %1747, %v74_v27   ;;  %v27_v26 = vld [vmem:[%s2892_s1 + $0x68] sm:$0xff]  ;;  %v50_v27 = vld [vmem:[%s2892_s1 + $0x120] sm:$0xff] }
  0x26   :  { %1562 = vmatpush3.xpose.msk.msra.mxu0 %vm345_vm0, %v110_v25  ;;  %1735 = vmatpush3.xpose.msk.msra.mxu1 %vm345_vm0, %v110_v25  ;;  %v49_v25 = vld [vmem:[%s2892_s1 + $0x118] sm:$0xff] }
  0x27   :  { %1563 = vmatprep.subr.mxu0 %v1764_v0  ;;  %1720 = vmatprep.subr.mxu1 %v1764_v0 }
  0x28   :  { %202 = vperm.xlu0 %1746, %v75_v29   ;;  %207 = vperm.xlu1 %1747, %v76_v30   ;;  %v51_v29 = vld [vmem:[%s2892_s1 + $0x128] sm:$0xff]  ;;  %v29_v30 = vld [vmem:[%s2892_s1 + $0x78] sm:$0xff] }
  0x2a   :  { %1564 = vmatpush3.xpose.msk.msra.mxu0 %vm345_vm0, %v109_v28  ;;  %1736 = vmatpush3.xpose.msk.msra.mxu1 %vm345_vm0, %v109_v28  ;;  %v28_v28 = vld [vmem:[%s2892_s1 + $0x70] sm:$0xff] }
  0x2b   :  { %1565 = vmatprep.subr.mxu0 %v1764_v0  ;;  %1721 = vmatprep.subr.mxu1 %v1764_v0 }
  0x2c   :  { %212 = vperm.xlu0 %1746, %v77_v32   ;;  %217 = vperm.xlu1 %1747, %v78_v33   ;;  %v30_v32 = vld [vmem:[%s2892_s1 + $0x80] sm:$0xff]  ;;  %v53_v33 = vld [vmem:[%s2892_s1 + $0x138] sm:$0xff] }
  0x2e   :  { %1566 = vmatpush3.xpose.msk.msra.mxu0 %vm345_vm0, %v108_v31  ;;  %1737 = vmatpush3.xpose.msk.msra.mxu1 %vm345_vm0, %v108_v31  ;;  %v52_v31 = vld [vmem:[%s2892_s1 + $0x130] sm:$0xff] }
  0x2f   :  { %1567 = vmatprep.subr.mxu0 %v1764_v0  ;;  %1722 = vmatprep.subr.mxu1 %v1764_v0 }
  0x30   :  { %222 = vperm.xlu0 %1746, %v79_v35   ;;  %227 = vperm.xlu1 %1747, %v80_v36   ;;  %v54_v35 = vld [vmem:[%s2892_s1 + $0x140] sm:$0xff]  ;;  %v32_v36 = vld [vmem:[%s2892_s1 + $0x90] sm:$0xff] }
  0x32   :  { %1568 = vmatpush3.xpose.msk.msra.mxu0 %vm345_vm0, %v107_v34  ;;  %1738 = vmatpush3.xpose.msk.msra.mxu1 %vm345_vm0, %v107_v34  ;;  %v31_v34 = vld [vmem:[%s2892_s1 + $0x88] sm:$0xff] }
  0x33   :  { %1569 = vmatprep.subr.mxu0 %v1764_v0  ;;  %1723 = vmatprep.subr.mxu1 %v1764_v0 }
  0x34   :  { %232 = vperm.xlu0 %1746, %v81_v38   ;;  %237 = vperm.xlu1 %1747, %v82_v39   ;;  %v33_v38 = vld [vmem:[%s2892_s1 + $0x98] sm:$0xff]  ;;  %v56_v39 = vld [vmem:[%s2892_s1 + $0x150] sm:$0xff] }
  0x36   :  { %1570 = vmatpush3.xpose.msk.msra.mxu0 %vm345_vm0, %v106_v37  ;;  %1739 = vmatpush3.xpose.msk.msra.mxu1 %vm345_vm0, %v106_v37  ;;  %v55_v37 = vld [vmem:[%s2892_s1 + $0x148] sm:$0xff] }
  0x37   :  { %1571 = vmatprep.subr.mxu0 %v1764_v0  ;;  %1724 = vmatprep.subr.mxu1 %v1764_v0 }
  0x38   :  { %242 = vperm.xlu0 %1746, %v83_v41   ;;  %247 = vperm.xlu1 %1747, %v84_v42   ;;  %v57_v41 = vld [vmem:[%s2892_s1 + $0x158] sm:$0xff]  ;;  %v35_v42 = vld [vmem:[%s2892_s1 + $0xa8] sm:$0xff] }
  0x3a   :  { %1572 = vmatpush3.xpose.msk.msra.mxu0 %vm345_vm0, %v105_v40  ;;  %1740 = vmatpush3.xpose.msk.msra.mxu1 %vm345_vm0, %v105_v40  ;;  %v34_v40 = vld [vmem:[%s2892_s1 + $0xa0] sm:$0xff] }
  0x3b   :  { %1573 = vmatprep.subr.mxu0 %v1764_v0  ;;  %1725 = vmatprep.subr.mxu1 %v1764_v0 }
  0x3c   :  { %252 = vperm.xlu0 %1746, %v85_v44   ;;  %257 = vperm.xlu1 %1747, %v86_v45   ;;  %v36_v44 = vld [vmem:[%s2892_s1 + $0xb0] sm:$0xff] }
  0x3e   :  { %1574 = vmatpush3.xpose.msk.msra.mxu0 %vm345_vm0, %v104_v43  ;;  %1741 = vmatpush3.xpose.msk.msra.mxu1 %vm345_vm0, %v104_v43  ;;  %v58_v43 = vld [vmem:[%s2892_s1 + $0x160] sm:$0xff] }
  0x40   :  { %262 = vperm.xlu0 %1746, %v87_v48   ;;  %267 = vperm.xlu1 %1747, %v88_v49  }
  0x41   :  { %1576 = vmatmul.mubr.msk.f32.vlgmr.msra.gmra.mxu0 %vm345_vm0, %v14_v46  ;;  %1645 = vmatmul.mubr.msk.f32.vlgmr.msra.gmra.mxu1 %vm345_vm0, %v37_v47 }
  0x42   :  { %1578 = vmatprep.mubr.msk.f32.mxu0 %vm1765_vm1, %v1764_v0  ;;  %1647 = vmatprep.mubr.msk.f32.mxu1 %vm1765_vm1, %v1764_v0 }
  0x44   :  { %272 = vperm.xlu0 %1746, %v89_v52   ;;  %277 = vperm.xlu1 %1747, %v90_v53  }
  0x45   :  { %1579 = vmatmul.mubr.msk.f32.gmra.mxu0 %vm345_vm0, %v15_v50  ;;  %1648 = vmatmul.mubr.msk.f32.gmra.mxu1 %vm345_vm0, %v38_v51 }
  0x46   :  { %1581 = vmatprep.mubr.msk.f32.mxu0 %vm1765_vm1, %v1764_v0  ;;  %1650 = vmatprep.mubr.msk.f32.mxu1 %vm1765_vm1, %v1764_v0 }
  0x48   :  { %282 = vperm.xlu0 %1746, %v91_v56   ;;  %287 = vperm.xlu1 %1747, %v92_v57  }
  0x49   :  { %1582 = vmatmul.mubr.msk.f32.gmra.mxu0 %vm345_vm0, %v16_v54  ;;  %1651 = vmatmul.mubr.msk.f32.gmra.mxu1 %vm345_vm0, %v39_v55 }
  0x4a   :  { %1584 = vmatprep.mubr.msk.f32.mxu0 %vm1765_vm1, %v1764_v0  ;;  %1653 = vmatprep.mubr.msk.f32.mxu1 %vm1765_vm1, %v1764_v0 }
  0x4c   :  { %292 = vperm.xlu0 %1746, %v93_v60   ;;  %297 = vperm.xlu1 %1747, %v94_v61  }
  0x4d   :  { %1585 = vmatmul.mubr.msk.f32.gmra.mxu0 %vm345_vm0, %v17_v58  ;;  %1654 = vmatmul.mubr.msk.f32.gmra.mxu1 %vm345_vm0, %v40_v59 }
  0x4e   :  { %1587 = vmatprep.mubr.msk.f32.mxu0 %vm1765_vm1, %v1764_v0  ;;  %1656 = vmatprep.mubr.msk.f32.mxu1 %vm1765_vm1, %v1764_v0 }
  0x50   :  { %302 = vperm.xlu0 %1746, %v95_v1   ;;  %307 = vperm.xlu1 %1747, %v96_v2  }
  0x51   :  { %1588 = vmatmul.mubr.msk.f32.gmra.mxu0 %vm345_vm0, %v18_v62  ;;  %1657 = vmatmul.mubr.msk.f32.gmra.mxu1 %vm345_vm0, %v41_v63 }
  0x52   :  { %1590 = vmatprep.mubr.msk.f32.mxu0 %vm1765_vm1, %v1764_v0  ;;  %1659 = vmatprep.mubr.msk.f32.mxu1 %vm1765_vm1, %v1764_v0 }
  0x54   :  { %312 = vperm.xlu0 %1746, %v97_v5   ;;  %317 = vperm.xlu1 %1747, %v98_v6  }
  0x55   :  { %1591 = vmatmul.mubr.msk.f32.gmra.mxu0 %vm345_vm0, %v19_v3  ;;  %1660 = vmatmul.mubr.msk.f32.gmra.mxu1 %vm345_vm0, %v42_v4 }
  0x56   :  { %1593 = vmatprep.mubr.msk.f32.mxu0 %vm1765_vm1, %v1764_v0  ;;  %1662 = vmatprep.mubr.msk.f32.mxu1 %vm1765_vm1, %v1764_v0 }
  0x58   :  { %322 = vperm.xlu0 %1746, %v99_v9   ;;  %327 = vperm.xlu1 %1747, %v100_v10  }
  0x59   :  { %1594 = vmatmul.mubr.msk.f32.gmra.mxu0 %vm345_vm0, %v20_v7  ;;  %1663 = vmatmul.mubr.msk.f32.gmra.mxu1 %vm345_vm0, %v43_v8 }
  0x5a   :  { %1596 = vmatprep.mubr.msk.f32.mxu0 %vm1765_vm1, %v1764_v0  ;;  %1665 = vmatprep.mubr.msk.f32.mxu1 %vm1765_vm1, %v1764_v0 }
  0x5c   :  { %332 = vperm.xlu0 %1746, %v101_v13   ;;  %337 = vperm.xlu1 %1747, %v102_v14  }
  0x5d   :  { %1597 = vmatmul.mubr.msk.f32.gmra.mxu0 %vm345_vm0, %v21_v11  ;;  %1666 = vmatmul.mubr.msk.f32.gmra.mxu1 %vm345_vm0, %v44_v12 }
  0x5e   :  { %1599 = vmatprep.mubr.msk.f32.mxu0 %vm1765_vm1, %v1764_v0  ;;  %1668 = vmatprep.mubr.msk.f32.mxu1 %vm1765_vm1, %v1764_v0 }
  0x60   :  { %342 = vperm.xlu0 %1746, %v103_v17  }
  0x61   :  { %1600 = vmatmul.mubr.msk.f32.gmra.mxu0 %vm345_vm0, %v22_v15  ;;  %1669 = vmatmul.mubr.msk.f32.gmra.mxu1 %vm345_vm0, %v45_v16 }
  0x62   :  { %1602 = vmatprep.mubr.msk.f32.mxu0 %vm1765_vm1, %v1764_v0  ;;  %1671 = vmatprep.mubr.msk.f32.mxu1 %vm1765_vm1, %v1764_v0 }
  0x65   :  { %1603 = vmatmul.mubr.msk.f32.gmra.mxu0 %vm345_vm0, %v23_v18  ;;  %1672 = vmatmul.mubr.msk.f32.gmra.mxu1 %vm345_vm0, %v46_v19 }
  0x66   :  { %1605 = vmatprep.mubr.msk.f32.mxu0 %vm1765_vm1, %v1764_v0  ;;  %1674 = vmatprep.mubr.msk.f32.mxu1 %vm1765_vm1, %v1764_v0 }
  0x69   :  { %1606 = vmatmul.mubr.msk.f32.gmra.mxu0 %vm345_vm0, %v24_v20  ;;  %1675 = vmatmul.mubr.msk.f32.gmra.mxu1 %vm345_vm0, %v47_v21 }
  0x6a   :  { %1608 = vmatprep.mubr.msk.f32.mxu0 %vm1765_vm1, %v1764_v0  ;;  %1677 = vmatprep.mubr.msk.f32.mxu1 %vm1765_vm1, %v1764_v0 }
  0x6d   :  { %1609 = vmatmul.mubr.msk.f32.gmra.mxu0 %vm345_vm0, %v25_v22  ;;  %1678 = vmatmul.mubr.msk.f32.gmra.mxu1 %vm345_vm0, %v48_v23 }
  0x6e   :  { %1611 = vmatprep.mubr.msk.f32.mxu0 %vm1765_vm1, %v1764_v0  ;;  %1680 = vmatprep.mubr.msk.f32.mxu1 %vm1765_vm1, %v1764_v0 }
  0x71   :  { %1612 = vmatmul.mubr.msk.f32.gmra.mxu0 %vm345_vm0, %v26_v24  ;;  %1681 = vmatmul.mubr.msk.f32.gmra.mxu1 %vm345_vm0, %v49_v25  ;;  %v819_v25 = vlaneseq }
  0x72   :  { %1614 = vmatprep.mubr.msk.f32.mxu0 %vm1765_vm1, %v1764_v0  ;;  %1683 = vmatprep.mubr.msk.f32.mxu1 %vm1765_vm1, %v1764_v0 }
  0x75   :  { %1615 = vmatmul.mubr.msk.f32.gmra.mxu0 %vm345_vm0, %v27_v26  ;;  %1684 = vmatmul.mubr.msk.f32.gmra.mxu1 %vm345_vm0, %v50_v27 }
  0x76   :  { %1617 = vmatprep.mubr.msk.f32.mxu0 %vm1765_vm1, %v1764_v0  ;;  %1686 = vmatprep.mubr.msk.f32.mxu1 %vm1765_vm1, %v1764_v0 }
  0x79   :  { %1618 = vmatmul.mubr.msk.f32.gmra.mxu0 %vm345_vm0, %v28_v28  ;;  %1687 = vmatmul.mubr.msk.f32.gmra.mxu1 %vm345_vm0, %v51_v29 }
  0x7a   :  { %1620 = vmatprep.mubr.msk.f32.mxu0 %vm1765_vm1, %v1764_v0  ;;  %1689 = vmatprep.mubr.msk.f32.mxu1 %vm1765_vm1, %v1764_v0 }
  0x7d   :  { %1621 = vmatmul.mubr.msk.f32.gmra.mxu0 %vm345_vm0, %v29_v30  ;;  %1690 = vmatmul.mubr.msk.f32.gmra.mxu1 %vm345_vm0, %v52_v31  ;;  %v820_v31 = vshrl.u32 %v819_v25, 7 }
  0x7e   :  { %1623 = vmatprep.mubr.msk.f32.mxu0 %vm1765_vm1, %v1764_v0  ;;  %1692 = vmatprep.mubr.msk.f32.mxu1 %vm1765_vm1, %v1764_v0 }
  0x81   :  { %1624 = vmatmul.mubr.msk.f32.gmra.mxu0 %vm345_vm0, %v30_v32  ;;  %1693 = vmatmul.mubr.msk.f32.gmra.mxu1 %vm345_vm0, %v53_v33 }
  0x82   :  { %1626 = vmatprep.mubr.msk.f32.mxu0 %vm1765_vm1, %v1764_v0  ;;  %1695 = vmatprep.mubr.msk.f32.mxu1 %vm1765_vm1, %v1764_v0 }
  0x83   :  { %v2305_v45 = vpop.permute.xlu1 %132  ;;  %v2311_v48 = vpop.permute.xlu0 %122 }
  0x85   :  { %1627 = vmatmul.mubr.msk.f32.gmra.mxu0 %vm345_vm0, %v31_v34  ;;  %1696 = vmatmul.mubr.msk.f32.gmra.mxu1 %vm345_vm0, %v54_v35 }
  0x86   :  { %1629 = vmatprep.mubr.msk.f32.mxu0 %vm1765_vm1, %v1764_v0  ;;  %1698 = vmatprep.mubr.msk.f32.mxu1 %vm1765_vm1, %v1764_v0 }
  0x87   :  { %v2313_v51 = vpop.permute.xlu1 %137  ;;  %v128_v55 = vpop.permute.xlu0 %127 }
  0x89   :  { %1630 = vmatmul.mubr.msk.f32.gmra.mxu0 %vm345_vm0, %v32_v36  ;;  %1699 = vmatmul.mubr.msk.f32.gmra.mxu1 %vm345_vm0, %v55_v37 }
  0x8a   :  { %1632 = vmatprep.mubr.msk.f32.mxu0 %vm1765_vm1, %v1764_v0  ;;  %1701 = vmatprep.mubr.msk.f32.mxu1 %vm1765_vm1, %v1764_v0 }
  0x8b   :  { %v2323_v58 = vpop.permute.xlu1 %177  ;;  %v173_v63 = vpop.permute.xlu0 %172 }
  0x8d   :  { %1633 = vmatmul.mubr.msk.f32.gmra.mxu0 %vm345_vm0, %v33_v38  ;;  %1702 = vmatmul.mubr.msk.f32.gmra.mxu1 %vm345_vm0, %v56_v39  ;;  %v2369_v38 = vsub.s32 0, %v820_v31  ;;  %v2371_v39 = vsub.s32 1, %v820_v31 }
  0x8e   :  { %1635 = vmatprep.mubr.msk.f32.mxu0 %vm1765_vm1, %v1764_v0  ;;  %1704 = vmatprep.mubr.msk.f32.mxu1 %vm1765_vm1, %v1764_v0 }
  0x8f   :  { %v2329_v3 = vpop.permute.xlu1 %147  ;;  %v143_v8 = vpop.permute.xlu0 %142 }
  0x91   :  { %1636 = vmatmul.mubr.msk.f32.gmra.mxu0 %vm345_vm0, %v34_v40  ;;  %1705 = vmatmul.mubr.msk.f32.gmra.mxu1 %vm345_vm0, %v57_v41  ;;  %v2373_v40 = vsub.s32 2, %v820_v31 }
  0x92   :  { %1638 = vmatprep.mubr.msk.f32.mxu0 %vm1765_vm1, %v1764_v0  ;;  %1707 = vmatprep.mubr.msk.f32.mxu1 %vm1765_vm1, %v1764_v0 }
  0x93   :  { %v2339_v11 = vpop.permute.xlu1 %152  ;;  %v2345_v16 = vpop.permute.xlu0 %182 }
  0x95   :  { %1639 = vmatmul.mubr.msk.f32.gmra.mxu0 %vm345_vm0, %v35_v42  ;;  %1708 = vmatmul.mubr.msk.f32.gmra.mxu1 %vm345_vm0, %v58_v43  ;;  %v2375_v42 = vsub.s32 3, %v820_v31  ;;  %v2377_v43 = vsub.s32 5, %v820_v31 }
  0x96   :  { %1641 = vmatprep.mubr.msk.f32.mxu0 %vm1765_vm1, %v1764_v0 }
  0x97   :  { %v2347_v19 = vpop.permute.xlu1 %162  ;;  %v2353_v24 = vpop.permute.xlu0 %157  ;;  %2906 = vst [vmem:[#allocation2_spill] sm:$0xff] %v2377_v43 }
  0x99   :  { %1642 = vmatmul.mubr.msk.f32.gmra.mxu0 %vm345_vm0, %v36_v44  ;;  %v2379_v44 = vsub.s32 6, %v820_v31 }
  0x9b   :  { %v2359_v28 = vpop.permute.xlu1 %187  ;;  %v2365_v34 = vpop.permute.xlu0 %167  ;;  %2907 = vst [vmem:[#allocation3_spill] sm:$0xff] %v2379_v44 }
  0x9f   :  { %v2367_v37 = vpop.permute.xlu1 %197 }
 0x101   :  { %v2307_v46 = vpop.f32.mrf.mxu0  ;;  %v2309_v47 = vpop.f32.mrf.mxu1 }
 0x103   :  { %v1577_v49 = vpop.f32.mrf.mxu0  ;;  %v1646_v50 = vpop.f32.mrf.mxu1 }
 0x104   :  { %v2381_v49 = vsub.s32 7, %v820_v31 }
 0x105   :  { %v2315_v52 = vpop.f32.mrf.mxu0  ;;  %v2317_v0 = vpop.f32.mrf.mxu1 }
 0x106   :  { %2908 = vst [vmem:[#allocation4_spill] sm:$0xff] %v2381_v49 }
 0x107   :  { %v1580_v53 = vpop.f32.mrf.mxu0  ;;  %v1649_v54 = vpop.f32.mrf.mxu1 }
 0x108   :  { %v596_v54 = vadd.f32 %v2307_v46, %v2311_v48 }
 0x109   :  { %v2319_v56 = vpop.f32.mrf.mxu0  ;;  %v2321_v57 = vpop.f32.mrf.mxu1 }
 0x10b   :  { %v1583_v59 = vpop.f32.mrf.mxu0  ;;  %v1652_v60 = vpop.f32.mrf.mxu1 }
 0x10c   :  { %v2387_v59 = vsub.s32 4, %v820_v31 }
 0x10d   :  { %v2325_v61 = vpop.f32.mrf.mxu0  ;;  %v2327_v62 = vpop.f32.mrf.mxu1 }
 0x10e   :  { %2910 = vst [vmem:[#allocation6_spill] sm:$0xff] %v2387_v59 }
 0x10f   :  { %v1586_v1 = vpop.f32.mrf.mxu0  ;;  %v1655_v2 = vpop.f32.mrf.mxu1 }
 0x110   :  { %v2389_v2 = vpop.permute.xlu0 %192 }
 0x111   :  { %v2331_v4 = vpop.f32.mrf.mxu0  ;;  %v2333_v5 = vpop.f32.mrf.mxu1 }
 0x113   :  { %v1589_v6 = vpop.f32.mrf.mxu0  ;;  %v1658_v7 = vpop.f32.mrf.mxu1 }
 0x114   :  { %v601_v6 = vadd.f32 %v2315_v52, %v128_v55  ;;  %v606_v52 = vadd.f32 %v2319_v56, %v2305_v45 }
 0x115   :  { %v2335_v9 = vpop.f32.mrf.mxu0  ;;  %v2337_v10 = vpop.f32.mrf.mxu1 }
 0x116   :  { %v621_v45 = vadd.f32 %v2335_v9, %v2329_v3 }
 0x117   :  { %v1592_v12 = vpop.f32.mrf.mxu0  ;;  %v1661_v13 = vpop.f32.mrf.mxu1 }
 0x119   :  { %v2341_v14 = vpop.f32.mrf.mxu0  ;;  %v2343_v15 = vpop.f32.mrf.mxu1 }
 0x11b   :  { %v1595_v17 = vpop.f32.mrf.mxu0  ;;  %v1664_v18 = vpop.f32.mrf.mxu1 }
 0x11d   :  { %v2349_v20 = vpop.f32.mrf.mxu0  ;;  %v2351_v21 = vpop.f32.mrf.mxu1 }
 0x11f   :  { %v1598_v22 = vpop.f32.mrf.mxu0  ;;  %v1667_v23 = vpop.f32.mrf.mxu1 }
 0x120   :  { %v2401_v23 = vpop.permute.xlu1 %207 }
 0x121   :  { %v2355_v26 = vpop.f32.mrf.mxu0  ;;  %v2357_v27 = vpop.f32.mrf.mxu1  ;;  %2912 = vst [vmem:[#allocation8_spill] sm:$0xff] %v2401_v23 }
 0x123   :  { %v1601_v29 = vpop.f32.mrf.mxu0  ;;  %v1670_v30 = vpop.f32.mrf.mxu1 }
 0x124   :  { %v611_v29 = vadd.f32 %v2325_v61, %v2313_v51  ;;  %v616_v30 = vadd.f32 %v2331_v4, %v143_v8  ;;  %v2414_v61 = vpop.permute.xlu0 %202 }
 0x125   :  { %v2361_v32 = vpop.f32.mrf.mxu0  ;;  %v2363_v33 = vpop.f32.mrf.mxu1 }
 0x127   :  { %v1604_v35 = vpop.f32.mrf.mxu0  ;;  %v1673_v36 = vpop.f32.mrf.mxu1 }
 0x129   :  { %v645_v41 = vpop.f32.mrf.mxu0  ;;  %v2383_v50 = vpop.f32.mrf.mxu1 }
 0x12a   :  { %2909 = vst [vmem:[#allocation5_spill] sm:$0xff] %v2383_v50  ;;  %v646_v53 = vadd.f32 %v645_v41, %v173_v63 }
 0x12b   :  { %v1607_v60 = vpop.f32.mrf.mxu0  ;;  %v1676_v1 = vpop.f32.mrf.mxu1 }
 0x12c   :  { %v822_v7 = vrot.slane %v646_v53, %v2369_v38  ;;  %v827_v12 = vrot.slane %v646_v53, %v2371_v39  ;;  %v833_v13 = vrot.slane %v646_v53, %v2373_v40  ;;  %v839_v17 = vrot.slane %v646_v53, %v2375_v42 }
 0x12d   :  { %v930_v63 = vrot.slane %v646_v53, %v2377_v43  ;;  %v935_v46 = vrot.slane %v646_v53, %v2379_v44  ;;  %v941_v48 = vrot.slane %v646_v53, %v2381_v49  ;;  %v650_v18 = vpop.f32.mrf.mxu0  ;;  %v2399_v22 = vpop.f32.mrf.mxu1 }
 0x12e   :  { %2911 = vst [vmem:[#allocation7_spill] sm:$0xff] %v2399_v22  ;;  %v823_v55 = vmul.f32 %v822_v7, %v596_v54  ;;  %v828_v25 = vmul.f32 %v827_v12, %v601_v6  ;;  %v834_v1 = vmul.f32 %v833_v13, %v606_v52  ;;  %v845_v22 = vrot.slane %v646_v53, %v2387_v59 }
 0x12f   :  { %v931_v31 = vmul.f32 %v930_v63, %v596_v54  ;;  %v936_v35 = vmul.f32 %v935_v46, %v601_v6  ;;  %v1610_v36 = vpop.f32.mrf.mxu0  ;;  %v1679_v41 = vpop.f32.mrf.mxu1  ;;  %v651_v23 = vadd.f32 %v650_v18, %v2323_v58  ;;  %v840_v56 = vmul.f32 %v839_v17, %v611_v29 }
 0x130   :  { %v829_v60 = vadd.f32 %v828_v25, %v823_v55  ;;  %v942_v12 = vmul.f32 %v941_v48, %v606_v52  ;;  %v626_v58 = vadd.f32 %v2341_v14, %v2339_v11  ;;  %v2423_v63 = vpop.permute.xlu1 %217  ;;  %v846_v48 = vmul.f32 %v845_v22, %v616_v30 }
 0x131   :  { %v937_v7 = vadd.f32 %v936_v35, %v931_v31  ;;  %v655_v50 = vpop.f32.mrf.mxu0  ;;  %v2412_v51 = vpop.f32.mrf.mxu1  ;;  %v947_v8 = vrot.slane %v651_v23, %v2369_v38  ;;  %v953_v54 = vrot.slane %v651_v23, %v2371_v39  ;;  %v1038_v53 = vrot.slane %v651_v23, %v2373_v40  ;;  %2913 = vst [vmem:[#allocation9_spill] sm:$0xff] %v2423_v63 }
 0x132   :  { %v835_v4 = vadd.f32 %v834_v1, %v829_v60  ;;  %v1043_v3 = vrot.slane %v651_v23, %v2375_v42  ;;  %v1049_v9 = vrot.slane %v651_v23, %v2387_v59  ;;  %v631_v55 = vadd.f32 %v2349_v20, %v2353_v24 }
 0x133   :  { %v943_v6 = vadd.f32 %v942_v12, %v937_v7  ;;  %v1613_v13 = vpop.f32.mrf.mxu0  ;;  %v1682_v17 = vpop.f32.mrf.mxu1  ;;  %v948_v18 = vmul.f32 %v947_v8, %v611_v29  ;;  %v1039_v52 = vmul.f32 %v1038_v53, %v621_v45  ;;  %v954_v25 = vmul.f32 %v953_v54, %v616_v30 }
 0x134   :  { %v841_v46 = vadd.f32 %v840_v56, %v835_v4  ;;  %v1044_v31 = vmul.f32 %v1043_v3, %v626_v58  ;;  %v1055_v11 = vrot.slane %v651_v23, %v2377_v43  ;;  %v656_v60 = vadd.f32 %v655_v50, %v2345_v16  ;;  %v2439_v7 = vpop.permute.xlu0 %212 }
 0x135   :  { %v2428_v14 = vpop.f32.mrf.mxu0  ;;  %v2430_v35 = vpop.f32.mrf.mxu1  ;;  %v949_v41 = vadd.f32 %v948_v18, %v943_v6  ;;  %v1148_v22 = vrot.slane %v651_v23, %v2381_v49  ;;  %v636_v29 = vadd.f32 %v2355_v26, %v2347_v19  ;;  %v1050_v20 = vmul.f32 %v1049_v9, %v631_v55  ;;  %2914 = vst [vmem:[#allocation10_spill] sm:$0xff] %v2439_v7 }
 0x136   :  { %v2432_v36 = vadd.f32 %v846_v48, %v841_v46  ;;  %v1045_v1 = vadd.f32 %v1044_v31, %v1039_v52  ;;  %v1061_v24 = vrot.slane %v651_v23, %v2379_v44  ;;  %v641_v12 = vadd.f32 %v2361_v32, %v2365_v34  ;;  %v2450_v6 = vpop.permute.xlu1 %227 }
 0x137   :  { %v1616_v30 = vpop.f32.mrf.mxu0  ;;  %v1685_v56 = vpop.f32.mrf.mxu1  ;;  %v955_v8 = vadd.f32 %v954_v25, %v949_v41  ;;  %v1153_v16 = vrot.slane %v656_v60, %v2369_v38  ;;  %v1056_v54 = vmul.f32 %v1055_v11, %v636_v29  ;;  %v1149_v53 = vmul.f32 %v1148_v22, %v621_v45  ;;  %2915 = vst [vmem:[#allocation11_spill] sm:$0xff] %v2450_v6 }
 0x138   :  { %v848_v4 = vrot.slane %v2432_v36, 4  ;;  %v1051_v50 = vadd.f32 %v1050_v20, %v1045_v1  ;;  %v1159_v19 = vrot.slane %v656_v60, %v2371_v39  ;;  %v1165_v34 = vrot.slane %v656_v60, %v2373_v40  ;;  %v2459_v1 = vpop.permute.xlu0 %222 }
 0x139   :  { %v2446_v26 = vpop.f32.mrf.mxu0  ;;  %v2448_v23 = vpop.f32.mrf.mxu1  ;;  %v956_v9 = vrot.slane %v955_v8, 4  ;;  %v1154_v32 = vmul.f32 %v1153_v16, %v626_v58  ;;  %v1062_v17 = vmul.f32 %v1061_v24, %v641_v12  ;;  %v1171_v46 = vrot.slane %v656_v60, %v2375_v42  ;;  %2916 = vst [vmem:[#allocation12_spill] sm:$0xff] %v2459_v1 }
 0x13a   :  { %v849_v3 = vmax.f32 %v2432_v36, %v848_v4  ;;  %v1057_v13 = vadd.f32 %v1056_v54, %v1051_v50  ;;  %v1160_v31 = vmul.f32 %v1159_v19, %v631_v55  ;;  %v1166_v56 = vmul.f32 %v1165_v34, %v636_v29  ;;  %v2461_v16 = vpop.permute.xlu1 %237 }
 0x13b   :  { %v1619_v48 = vpop.f32.mrf.mxu0  ;;  %v1688_v45 = vpop.f32.mrf.mxu1  ;;  %v957_v52 = vmax.f32 %v955_v8, %v956_v9  ;;  %v1155_v25 = vadd.f32 %v1154_v32, %v1149_v53  ;;  %v1172_v55 = vmul.f32 %v1171_v46, %v641_v12 }
 0x13c   :  { %v850_v18 = vrot.slane %v849_v3, 2  ;;  %v1063_v11 = vadd.f32 %v1062_v17, %v1057_v13  ;;  %v2467_v34 = vpop.permute.xlu0 %232 }
 0x13d   :  { %v2455_v41 = vpop.f32.mrf.mxu0  ;;  %v2457_v22 = vpop.f32.mrf.mxu1  ;;  %v958_v20 = vrot.slane %v957_v52, 2  ;;  %v1161_v30 = vadd.f32 %v1160_v31, %v1155_v25  ;;  %2917 = vst [vmem:[#allocation13_spill] sm:$0xff] %v2467_v34 }
 0x13e   :  { %v851_v58 = vmax.f32 %v849_v3, %v850_v18  ;;  %v1064_v24 = vrot.slane %v1063_v11, 4  ;;  %v2474_v46 = vpop.permute.xlu1 %247 }
 0x13f   :  { %v1622_v4 = vpop.f32.mrf.mxu0  ;;  %v1691_v60 = vpop.f32.mrf.mxu1  ;;  %v959_v54 = vmax.f32 %v957_v52, %v958_v20  ;;  %v1167_v53 = vadd.f32 %v1166_v56, %v1161_v30 }
 0x140   :  { %v852_v50 = vrot.slane %v851_v58, 1  ;;  %v1065_v19 = vmax.f32 %v1063_v11, %v1064_v24 }
 0x141   :  { %v2463_v9 = vpop.f32.mrf.mxu0  ;;  %v2465_v32 = vpop.f32.mrf.mxu1  ;;  %v960_v17 = vrot.slane %v959_v54, 1  ;;  %v1173_v3 = vadd.f32 %v1172_v55, %v1167_v53 }
 0x142   :  { %v853_v13 = vmax.f32 %v851_v58, %v852_v50  ;;  %v1066_v48 = vrot.slane %v1065_v19, 2 }
 0x143   :  { %v1625_v45 = vpop.f32.mrf.mxu0  ;;  %v1694_v29 = vpop.f32.mrf.mxu1  ;;  %v961_v25 = vmax.f32 %v959_v54, %v960_v17  ;;  %v1174_v31 = vrot.slane %v1173_v3, 4 }
 0x144   :  { %v854_v18 = vsub.f32 %v2432_v36, %v853_v13  ;;  %v1067_v52 = vmax.f32 %v1065_v19, %v1066_v48  ;;  %v2480_v19 = vpop.permute.xlu0 %242 }
 0x145   :  { %v2470_v20 = vpop.f32.mrf.mxu0  ;;  %v2472_v12 = vpop.f32.mrf.mxu1  ;;  %v962_v58 = vsub.f32 %v955_v8, %v961_v25  ;;  %v1175_v56 = vmax.f32 %v1173_v3, %v1174_v31 }
 0x146   :  { %2918 = vst [vmem:[#allocation14_spill] sm:$0xff] %v2472_v12  ;;  %v855_v30 = vmul.f32 1.442695, %v854_v18  ;;  %v1068_v24 = vrot.slane %v1067_v52, 1  ;;  %v2482_v8 = vpop.permute.xlu1 %257 }
 0x147   :  { %v1628_v4 = vpop.f32.mrf.mxu0  ;;  %v1697_v60 = vpop.f32.mrf.mxu1  ;;  %v963_v50 = vmul.f32 1.442695, %v962_v58  ;;  %v1176_v53 = vrot.slane %v1175_v56, 2 }
 0x148   :  { %1748 = vpow2.f32 %v855_v30  ;;  %v1069_v55 = vmax.f32 %v1067_v52, %v1068_v24  ;;  %v253_v24 = vpop.permute.xlu0 %252 }
 0x149   :  { %v2476_v36 = vpop.f32.mrf.mxu0  ;;  %v2478_v54 = vpop.f32.mrf.mxu1  ;;  %1750 = vpow2.f32 %v963_v50  ;;  %v1177_v13 = vmax.f32 %v1175_v56, %v1176_v53 }
 0x14a   :  { %2919 = vst [vmem:[#allocation15_spill] sm:$0xff] %v2476_v36  ;;  %2920 = vst [vmem:[#allocation16_spill] sm:$0xff] %v2478_v54  ;;  %v1070_v17 = vsub.f32 %v1063_v11, %v1069_v55  ;;  %v2492_v11 = vpop.permute.xlu1 %267 }
 0x14b   :  { %v1631_v48 = vpop.f32.mrf.mxu0  ;;  %v1700_v45 = vpop.f32.mrf.mxu1  ;;  %v1178_v29 = vrot.slane %v1177_v13, 1 }
 0x14c   :  { %v1071_v18 = vmul.f32 1.442695, %v1070_v17 }
 0x14d   :  { %v2484_v25 = vpop.f32.mrf.mxu0  ;;  %v2486_v31 = vpop.f32.mrf.mxu1  ;;  %v1179_v52 = vmax.f32 %v1177_v13, %v1178_v29 }
 0x14e   :  { %2921 = vst [vmem:[#allocation17_spill] sm:$0xff] %v2484_v25  ;;  %2922 = vst [vmem:[#allocation18_spill] sm:$0xff] %v2486_v31  ;;  %1752 = vpow2.f32 %v1071_v18  ;;  %v263_v13 = vpop.permute.xlu0 %262 }
 0x14f   :  { %v1634_v30 = vpop.f32.mrf.mxu0  ;;  %v1703_v58 = vpop.f32.mrf.mxu1  ;;  %v1180_v4 = vsub.f32 %v1173_v3, %v1179_v52 }
 0x150   :  { %v2498_v52 = vpop.permute.xlu1 %277 }
 0x151   :  { %v2488_v60 = vpop.f32.mrf.mxu0  ;;  %v2490_v56 = vpop.f32.mrf.mxu1  ;;  %v1181_v50 = vmul.f32 1.442695, %v1180_v4 }
 0x152   :  { %2923 = vst [vmem:[#allocation19_spill] sm:$0xff] %v2488_v60  ;;  %2924 = vst [vmem:[#allocation20_spill] sm:$0xff] %v2490_v56  ;;  %v273_v59 = vpop.permute.xlu0 %272 }
 0x153   :  { %v1637_v53 = vpop.f32.mrf.mxu0  ;;  %v1706_v55 = vpop.f32.mrf.mxu1  ;;  %1754 = vpow2.f32 %v1181_v50 }
 0x154   :  { %v288_v34 = vpop.permute.xlu1 %287 }
 0x155   :  { %v1749_v17 = vpop.eup %1748  ;;  %v2494_v48 = vpop.f32.mrf.mxu0 }
 0x156   :  { %2925 = vst [vmem:[#allocation21_spill] sm:$0xff] %v2494_v48  ;;  %v2496_v45 = vpop.f32.mrf.mxu1  ;;  %v857_v29 = vrot.slane %v1749_v17, 4  ;;  %v1751_v18 = vpop.eup %1750 }
 0x157   :  { %2926 = vst [vmem:[#allocation22_spill] sm:$0xff] %v2496_v45  ;;  %v1640_v30 = vpop.f32.mrf.mxu0  ;;  %v965_v31 = vrot.slane %v1751_v18, 4  ;;  %v283_v60 = vpop.permute.xlu0 %282 }
 0x158   :  { %v1709_v3 = vpop.f32.mrf.mxu1  ;;  %v858_v58 = vadd.f32 %v1749_v17, %v857_v29 }
 0x159   :  { %v2500_v49 = vpop.f32.mrf.mxu0  ;;  %v966_v53 = vadd.f32 %v1751_v18, %v965_v31 }
 0x15a   :  { %2927 = vst [vmem:[#allocation23_spill] sm:$0xff] %v2500_v49  ;;  %v859_v4 = vrot.slane %v858_v58, 2 }
 0x15b   :  { %v1643_v55 = vpop.f32.mrf.mxu0  ;;  %v2502_v50 = vpop.eup %1752  ;;  %v967_v43 = vrot.slane %v966_v53, 2 }
 0x15c   :  { %v860_v44 = vadd.f32 %v859_v4, %v858_v58  ;;  %v1073_v45 = vrot.slane %v2502_v50, 4  ;;  %v298_v4 = vpop.permute.xlu1 %297 }
 0x15d   :  { %v968_v30 = vadd.f32 %v967_v43, %v966_v53 }
 0x15e   :  { %v861_v48 = vrot.slane %v860_v44, 1  ;;  %v1074_v3 = vadd.f32 %v2502_v50, %v1073_v45  ;;  %v293_v45 = vpop.permute.xlu0 %292 }
 0x15f   :  { %v969_v29 = vrot.slane %v968_v30, 1 }
 0x160   :  { %v862_v6 = vadd.f32 %v861_v48, %v860_v44  ;;  %v2506_v56 = vpop.eup %1754  ;;  %v1075_v49 = vrot.slane %v1074_v3, 2  ;;  %v308_v44 = vpop.permute.xlu1 %307 }
 0x161   :  { %v1183_v31 = vrot.slane %v2506_v56, 4  ;;  %v970_v55 = vadd.f32 %v969_v29, %v968_v30 }
 0x162   :  { %1756 = vrcp.f32 %v862_v6  ;;  %v1076_v58 = vadd.f32 %v1075_v49, %v1074_v3  ;;  %v303_v36 = vpop.permute.xlu0 %302  ;;  %v2514_v49 = vadd.f32 %v2309_v47, %v2461_v16  ;;  %v2518_v3 = vadd.f32 %v2317_v0, %v2480_v19 }
 0x163   :  { %v1184_v1 = vadd.f32 %v2506_v56, %v1183_v31  ;;  %1758 = vrcp.f32 %v970_v55  ;;  %v666_v47 = vadd.f32 %v2446_v26, %v2389_v2  ;;  %v2537_v0 = vadd.f32 %v2333_v5, %v2482_v8 }
 0x164   :  { %v1077_v25 = vrot.slane %v1076_v58, 1  ;;  %v318_v7 = vpop.permute.xlu1 %317  ;;  %v2546_v19 = vadd.f32 %v2337_v10, %v263_v13 }
 0x165   :  { %v1185_v63 = vrot.slane %v1184_v1, 2 }
 0x166   :  { %v1078_v43 = vadd.f32 %v1077_v25, %v1076_v58 }
 0x167   :  { %v1186_v53 = vadd.f32 %v1185_v63, %v1184_v1  ;;  %v2522_v63 = vadd.f32 %v2321_v57, %v2474_v46  ;;  %v2525_v1 = vadd.f32 %v2327_v62, %v253_v24  ;;  %v661_v57 = vadd.f32 %v2428_v14, %v2359_v28  ;;  %v313_v24 = vpop.permute.xlu0 %312 }
 0x168   :  { %1760 = vrcp.f32 %v1078_v43  ;;  %v671_v62 = vadd.f32 %v2455_v41, %v2367_v37  ;;  %v676_v46 = vadd.f32 %v2463_v9, %v2414_v61  ;;  %v2554_v37 = vadd.f32 %v2343_v15, %v2492_v11  ;;  %v328_v10 = vpop.permute.xlu1 %327  ;;  %v2928_v15 = vld [vmem:[#allocation5_spill] sm:$0xff] }
 0x169   :  { %v1187_v48 = vrot.slane %v1186_v53, 1  ;;  %v2557_v61 = vadd.f32 %v2351_v21, %v273_v59  ;;  %v2561_v41 = vadd.f32 %v2357_v27, %v2498_v52  ;;  %v2569_v11 = vadd.f32 %v2928_v15, %v288_v34  ;;  %v2929_v21 = vld [vmem:[#allocation7_spill] sm:$0xff] }
 0x16a   :  { %v2572_v59 = vadd.f32 %v2929_v21, %v293_v45  ;;  %v2575_v27 = vadd.f32 %v2412_v51, %v298_v4  ;;  %v2578_v52 = vadd.f32 %v2430_v35, %v303_v36  ;;  %v2586_v34 = vadd.f32 %v2448_v23, %v308_v44  ;;  %v2934_v44 = vld [vmem:[#allocation10_spill] sm:$0xff] }
 0x16b   :  { %v1188_v12 = vadd.f32 %v1187_v48, %v1186_v53  ;;  %v323_v48 = vpop.permute.xlu0 %322  ;;  %v2591_v51 = vadd.f32 %v2457_v22, %v313_v24  ;;  %v2594_v35 = vadd.f32 %v2465_v32, %v318_v7  ;;  %v2939_v32 = vld [vmem:[#allocation12_spill] sm:$0xff] }
 0x16c   :  { %v2941_v24 = vld [vmem:[#allocation20_spill] sm:$0xff] }
 0x16d   :  { %1762 = vrcp.f32 %v1188_v12  ;;  %2931 = vst [vmem:[#allocation5_spill] sm:$0xff] %v2591_v51 }
 0x16f   :  { %v1757_v54 = vpop.eup %1756 }
 0x170   :  { %v2510_v6 = vmul.f32 %v1757_v54, %v1749_v17  ;;  %v1759_v30 = vpop.eup %1758  ;;  %v2564_v17 = vadd.f32 %v2363_v33, %v283_v60  ;;  %v2930_v60 = vld [vmem:[#allocation8_spill] sm:$0xff] }
 0x171   :  { %v2529_v25 = vmul.f32 %v1759_v30, %v1751_v18  ;;  %v681_v58 = vadd.f32 %v2470_v20, %v2930_v60  ;;  %v2932_v30 = vld [vmem:[#allocation14_spill] sm:$0xff] }
 0x172   :  { %v868_v54 = vrot.slane %v2510_v6, %v2369_v38  ;;  %v874_v16 = vrot.slane %v2510_v6, %v2371_v39  ;;  %v882_v29 = vrot.slane %v2510_v6, %v2373_v40  ;;  %v890_v20 = vrot.slane %v2510_v6, %v2375_v42 }
 0x173   :  { %v976_v2 = vrot.slane %v2529_v25, %v2369_v38  ;;  %v982_v28 = vrot.slane %v2529_v25, %v2371_v39  ;;  %v990_v45 = vrot.slane %v2529_v25, %v2373_v40  ;;  %v2599_v23 = vadd.f32 %v2932_v30, %v323_v48 }
 0x174   :  { %v870_v26 = vmul.f32 %v868_v54, %v666_v47  ;;  %v869_v5 = vmul.f32 %v868_v54, %v661_v57  ;;  %v875_v8 = vmul.f32 %v874_v16, %v671_v62  ;;  %v876_v14 = vmul.f32 %v874_v16, %v676_v46  ;;  %v2935_v54 = vld [vmem:[#allocation15_spill] sm:$0xff]  ;;  %v2936_v16 = vld [vmem:[#allocation16_spill] sm:$0xff] }
 0x175   :  { %v978_v9 = vmul.f32 %v976_v2, %v666_v47  ;;  %v1761_v12 = vpop.eup %1760  ;;  %v984_v18 = vmul.f32 %v982_v28, %v676_v46  ;;  %v977_v31 = vmul.f32 %v976_v2, %v661_v57  ;;  %v983_v55 = vmul.f32 %v982_v28, %v671_v62  ;;  %2933 = vst [vmem:[#allocation7_spill] sm:$0xff] %v2599_v23  ;;  %v2937_v62 = vld [vmem:[#allocation9_spill] sm:$0xff]  ;;  %v2940_v2 = vld [vmem:[#allocation19_spill] sm:$0xff] }
 0x176   :  { %v878_v13 = vadd.f32 %v876_v14, %v870_v26  ;;  %v877_v33 = vadd.f32 %v875_v8, %v869_v5  ;;  %v2583_v43 = vmul.f32 %v1761_v12, %v2502_v50  ;;  %v883_v36 = vmul.f32 %v882_v29, %v681_v58  ;;  %v338_v50 = vpop.permute.xlu1 %337  ;;  %v2938_v46 = vld [vmem:[#allocation17_spill] sm:$0xff]  ;;  %v2942_v14 = vld [vmem:[#allocation11_spill] sm:$0xff] }
 0x177   :  { %v986_v53 = vadd.f32 %v984_v18, %v978_v9  ;;  %v985_v4 = vadd.f32 %v983_v55, %v977_v31  ;;  %v686_v47 = vadd.f32 %v2935_v54, %v2934_v44  ;;  %v2604_v57 = vadd.f32 %v2936_v16, %v328_v10  ;;  %v2943_v9 = vld [vmem:[#allocation21_spill] sm:$0xff]  ;;  %v2945_v10 = vld [vmem:[#allocation23_spill] sm:$0xff] }
 0x178   :  { %v885_v22 = vadd.f32 %v883_v36, %v877_v33  ;;  %v691_v7 = vadd.f32 %v2938_v46, %v2937_v62  ;;  %v696_v26 = vadd.f32 %v2940_v2, %v2939_v32  ;;  %v2611_v5 = vadd.f32 %v2941_v24, %v338_v50  ;;  %v2944_v18 = vld [vmem:[#allocation13_spill] sm:$0xff]  ;;  %v2946_v33 = vld [vmem:[#allocation6_spill] sm:$0xff]  ;;  %v2950_v46 = vld [vmem:[#allocation3_spill] sm:$0xff] }
 0x179   :  { %v1100_v8 = vrot.slane %v2583_v43, %v2373_v40  ;;  %v991_v28 = vmul.f32 %v990_v45, %v681_v58  ;;  %v701_v12 = vadd.f32 %v2943_v9, %v2942_v14  ;;  %v706_v15 = vadd.f32 %v2945_v10, %v2944_v18  ;;  %v2948_v50 = vld [vmem:[#allocation2_spill] sm:$0xff]  ;;  %v2952_v18 = vld [vmem:[#allocation4_spill] sm:$0xff] }
 0x17a   :  { %v1108_v21 = vrot.slane %v2583_v43, %v2375_v42  ;;  %v891_v31 = vmul.f32 %v890_v20, %v691_v7  ;;  %v998_v55 = vrot.slane %v2529_v25, %v2375_v42  ;;  %v898_v60 = vrot.slane %v2510_v6, %v2946_v33  ;;  %v1763_v44 = vpop.eup %1762 }
 0x17b   :  { %v2627_v48 = vrot.slane %v2583_v43, %v2946_v33  ;;  %v993_v58 = vadd.f32 %v991_v28, %v985_v4  ;;  %v884_v36 = vmul.f32 %v882_v29, %v686_v47  ;;  %v906_v30 = vrot.slane %v2510_v6, %v2948_v50 }
 0x17c   :  { %v2633_v54 = vrot.slane %v2583_v43, %v2948_v50  ;;  %v992_v16 = vmul.f32 %v990_v45, %v686_v47  ;;  %v893_v62 = vadd.f32 %v891_v31, %v885_v22  ;;  %v914_v32 = vrot.slane %v2510_v6, %v2950_v46 }
 0x17d   :  { %2947 = vst [vmem:[#allocation8_spill] sm:$0xff] %v2627_v48  ;;  %v2638_v2 = vmul.f32 %v1100_v8, %v2569_v11  ;;  %v886_v24 = vadd.f32 %v884_v36, %v878_v13  ;;  %v2642_v29 = vrot.slane %v2583_v43, %v2950_v46  ;;  %v999_v4 = vmul.f32 %v998_v55, %v691_v7 }
 0x17e   :  { %2949 = vst [vmem:[#allocation14_spill] sm:$0xff] %v2633_v54  ;;  %v2645_v28 = vmul.f32 %v1100_v8, %v2572_v59  ;;  %v2648_v14 = vmul.f32 %v1108_v21, %v2575_v27  ;;  %v2651_v45 = vmul.f32 %v1108_v21, %v2578_v52  ;;  %v899_v47 = vmul.f32 %v898_v60, %v701_v12 }
 0x17f   :  { %v2654_v22 = vmul.f32 %v1763_v44, %v2506_v56  ;;  %v2658_v13 = vmul.f32 %v2627_v48, %v2586_v34  ;;  %v1001_v9 = vadd.f32 %v999_v4, %v993_v58  ;;  %v922_v7 = vrot.slane %v2510_v6, %v2952_v18 }
 0x180   :  { %2951 = vst [vmem:[#allocation10_spill] sm:$0xff] %v2651_v45  ;;  %v901_v8 = vadd.f32 %v899_v47, %v893_v62  ;;  %v907_v10 = vmul.f32 %v906_v30, %v2514_v49  ;;  %v1006_v31 = vrot.slane %v2529_v25, %v2946_v33  ;;  %v1014_v21 = vrot.slane %v2529_v25, %v2948_v50 }
 0x181   :  { %v2669_v56 = vmul.f32 %v2633_v54, %v2594_v35  ;;  %v994_v36 = vadd.f32 %v992_v16, %v986_v53  ;;  %v892_v44 = vmul.f32 %v890_v20, %v696_v26  ;;  %v1022_v58 = vrot.slane %v2529_v25, %v2950_v46 }
 0x182   :  { %v909_v4 = vadd.f32 %v907_v10, %v901_v8  ;;  %v915_v6 = vmul.f32 %v914_v32, %v2522_v63  ;;  %v1007_v62 = vmul.f32 %v1006_v31, %v701_v12  ;;  %v1084_v47 = vrot.slane %v2583_v43, %v2369_v38 }
 0x183   :  { %v894_v23 = vadd.f32 %v892_v44, %v886_v24  ;;  %v1000_v45 = vmul.f32 %v998_v55, %v696_v26  ;;  %v923_v48 = vmul.f32 %v922_v7, %v2537_v0  ;;  %v1030_v54 = vrot.slane %v2529_v25, %v2952_v18 }
 0x184   :  { %v917_v51 = vadd.f32 %v915_v6, %v909_v4  ;;  %v1009_v53 = vadd.f32 %v1007_v62, %v1001_v9  ;;  %v1015_v20 = vmul.f32 %v1014_v21, %v2514_v49  ;;  %v1092_v16 = vrot.slane %v2583_v43, %v2371_v39 }
 0x185   :  { %v2684_v12 = vrot.slane %v2654_v22, %v2375_v42  ;;  %v1002_v8 = vadd.f32 %v1000_v45, %v994_v36  ;;  %v1023_v24 = vmul.f32 %v1022_v58, %v2522_v63  ;;  %v900_v26 = vmul.f32 %v898_v60, %v706_v15 }
 0x186   :  { %v925_v55 = vadd.f32 %v923_v48, %v917_v51  ;;  %v1017_v10 = vadd.f32 %v1015_v20, %v1009_v53  ;;  %v1085_v44 = vmul.f32 %v1084_v47, %v2554_v37  ;;  %v1194_v25 = vrot.slane %v2654_v22, %v2369_v38 }
 0x187   :  { %v1031_v49 = vmul.f32 %v1030_v54, %v2537_v0  ;;  %v902_v9 = vadd.f32 %v900_v26, %v894_v23  ;;  %v908_v4 = vmul.f32 %v906_v30, %v2518_v3  ;;  %v1008_v6 = vmul.f32 %v1006_v31, %v706_v15 }
 0x188   :  { %v1025_v62 = vadd.f32 %v1023_v24, %v1017_v10  ;;  %v1087_v42 = vadd.f32 %v1085_v44, %v925_v55  ;;  %v1093_v45 = vmul.f32 %v1092_v16, %v2561_v41  ;;  %v1202_v63 = vrot.slane %v2654_v22, %v2371_v39 }
 0x189   :  { %v910_v51 = vadd.f32 %v908_v4, %v902_v9  ;;  %v916_v60 = vmul.f32 %v914_v32, %v2525_v1  ;;  %v1010_v48 = vadd.f32 %v1008_v6, %v1002_v8  ;;  %v1016_v36 = vmul.f32 %v1014_v21, %v2518_v3 }
 0x18a   :  { %v1033_v38 = vadd.f32 %v1031_v49, %v1025_v62  ;;  %v1095_v53 = vadd.f32 %v1093_v45, %v1087_v42  ;;  %v1195_v0 = vmul.f32 %v1194_v25, %v2554_v37  ;;  %v924_v23 = vmul.f32 %v922_v7, %v2546_v19  ;;  %v2953_v42 = vld [vmem:[#allocation5_spill] sm:$0xff]  ;;  %v2954_v45 = vld [vmem:[#allocation8_spill] sm:$0xff] }
 0x18b   :  { %v918_v15 = vadd.f32 %v916_v60, %v910_v51  ;;  %v1018_v30 = vadd.f32 %v1016_v36, %v1010_v48  ;;  %v1024_v31 = vmul.f32 %v1022_v58, %v2525_v1  ;;  %v1210_v20 = vrot.slane %v2654_v22, %v2373_v40  ;;  %v2956_v60 = vld [vmem:[#allocation18_spill] sm:$0xff] }
 0x18c   :  { %v1226_v39 = vrot.slane %v2654_v22, %v2946_v33  ;;  %v1197_v32 = vadd.f32 %v1195_v0, %v1033_v38  ;;  %v1203_v8 = vmul.f32 %v1202_v63, %v2561_v41  ;;  %v1103_v3 = vadd.f32 %v2638_v2, %v1095_v53  ;;  %v2958_v53 = vld [vmem:[#allocation14_spill] sm:$0xff] }
 0x18d   :  { %v926_v21 = vadd.f32 %v924_v23, %v918_v15  ;;  %v1026_v24 = vadd.f32 %v1024_v31, %v1018_v30  ;;  %v1032_v37 = vmul.f32 %v1030_v54, %v2546_v19  ;;  %v1086_v7 = vmul.f32 %v1084_v47, %v2557_v61  ;;  %v333_v47 = vpop.permute.xlu0 %332  ;;  %v2959_v15 = vld [vmem:[#allocation22_spill] sm:$0xff] }
 0x18e   :  { %v1234_v1 = vrot.slane %v2654_v22, %v2948_v50  ;;  %v1205_v58 = vadd.f32 %v1203_v8, %v1197_v32  ;;  %v1211_v40 = vmul.f32 %v1210_v20, %v2569_v11  ;;  %v1111_v26 = vadd.f32 %v2648_v14, %v1103_v3 }
 0x18f   :  { %v1034_v33 = vadd.f32 %v1032_v37, %v1026_v24  ;;  %v1088_v55 = vadd.f32 %v1086_v7, %v926_v21  ;;  %v1094_v41 = vmul.f32 %v1092_v16, %v2564_v17  ;;  %v1196_v2 = vmul.f32 %v1194_v25, %v2557_v61 }
 0x190   :  { %v1219_v10 = vmul.f32 %v2684_v12, %v2575_v27  ;;  %v1140_v19 = vrot.slane %v2583_v43, %v2952_v18  ;;  %v1213_v54 = vadd.f32 %v1211_v40, %v1205_v58  ;;  %v1119_v50 = vadd.f32 %v2658_v13, %v1111_v26 }
 0x191   :  { %v1133_v11 = vmul.f32 %v2642_v29, %v2604_v57  ;;  %v1096_v14 = vadd.f32 %v1094_v41, %v1088_v55  ;;  %v1198_v44 = vadd.f32 %v1196_v2, %v1034_v33  ;;  %v1204_v49 = vmul.f32 %v1202_v63, %v2564_v17  ;;  %v343_v38 = vpop.permute.xlu0 %342 }
 0x192   :  { %v1227_v16 = vmul.f32 %v1226_v39, %v2586_v34  ;;  %v1242_v61 = vrot.slane %v2654_v22, %v2950_v46  ;;  %v1221_v27 = vadd.f32 %v1219_v10, %v1213_v54  ;;  %v1127_v25 = vadd.f32 %v2669_v56, %v1119_v50 }
 0x193   :  { %v1235_v43 = vmul.f32 %v1234_v1, %v2594_v35  ;;  %v1104_v13 = vadd.f32 %v2645_v28, %v1096_v14  ;;  %v1206_v9 = vadd.f32 %v1204_v49, %v1198_v44  ;;  %v1212_v4 = vmul.f32 %v1210_v20, %v2572_v59  ;;  %v2955_v35 = vld [vmem:[#allocation10_spill] sm:$0xff] }
 0x194   :  { %v1141_v6 = vmul.f32 %v1140_v19, %v2611_v5  ;;  %v1250_v17 = vrot.slane %v2654_v22, %v2952_v18  ;;  %v1229_v62 = vadd.f32 %v1227_v16, %v1221_v27  ;;  %v1135_v34 = vadd.f32 %v1133_v11, %v1127_v25  ;;  %v2957_v18 = vld [vmem:[#allocation7_spill] sm:$0xff] }
 0x195   :  { %v1220_v46 = vmul.f32 %v2684_v12, %v2578_v52  ;;  %v1118_v56 = vmul.f32 %v2954_v45, %v2953_v42  ;;  %v1214_v63 = vadd.f32 %v1212_v4, %v1206_v9  ;;  %v1112_v51 = vadd.f32 %v2955_v35, %v1104_v13 }
 0x196   :  { %v1243_v28 = vmul.f32 %v1242_v61, %v2604_v57  ;;  %v806_v59 = vadd.f32 %v2956_v60, %v333_v47  ;;  %v1237_v48 = vadd.f32 %v1235_v43, %v1229_v62  ;;  %v1143_v36 = vadd.f32 %v1141_v6, %v1135_v34 }
 0x197   :  { %v1228_v22 = vmul.f32 %v1226_v39, %v2953_v42  ;;  %v1126_v0 = vmul.f32 %v2958_v53, %v2957_v18  ;;  %v1222_v23 = vadd.f32 %v1220_v46, %v1214_v63  ;;  %v1120_v52 = vadd.f32 %v1118_v56, %v1112_v51 }
 0x198   :  { %v1251_v12 = vmul.f32 %v1250_v17, %v2611_v5  ;;  %v816_v30 = vadd.f32 %v2959_v15, %v343_v38  ;;  %v1245_v31 = vadd.f32 %v1243_v28, %v1237_v48  ;;  %1255 = vxpose.xlu1.b32.start [1/2] (short) %v1143_v36, 128  ;;  %v1236_v57 = vmul.f32 %v1234_v1, %v2957_v18 }
 0x199   :  { %v1134_v20 = vmul.f32 %v2642_v29, %v806_v59  ;;  %v1230_v32 = vadd.f32 %v1228_v22, %v1222_v23  ;;  %v1128_v8 = vadd.f32 %v1126_v0, %v1120_v52  ;;  %v1244_v21 = vmul.f32 %v1242_v61, %v806_v59 }
 0x19a   :  { %v1253_v3 = vadd.f32 %v1251_v12, %v1245_v31  ;;  %v1142_v39 = vmul.f32 %v1140_v19, %v816_v30  ;;  %v1252_v7 = vmul.f32 %v1250_v17, %v816_v30 }
 0x19b   :  { %v1238_v24 = vadd.f32 %v1236_v57, %v1230_v32  ;;  %v1136_v37 = vadd.f32 %v1134_v20, %v1128_v8 }
 0x19c   :  { %1304 = vxpose.xlu0.b32.start [1/2] (short) %v1253_v3, 128 }
 0x19d   :  { %v1246_v58 = vadd.f32 %v1244_v21, %v1238_v24  ;;  %v1144_v40 = vadd.f32 %v1142_v39, %v1136_v37 }
 0x19f   :  { %v1254_v5 = vadd.f32 %v1252_v7, %v1246_v58  ;;  %1256 = vxpose.xlu1.b32.end [2/2] (short) %v1144_v40, 128 }
 0x1a1   :  { %1305 = vxpose.xlu0.b32.end [2/2] (short) %v1254_v5, 128 }
 0x217   :  { %v1271_v26 = vpop.trf.xlu1 }
 0x218   :  { %1288 = vst.msk [vmem:[%s2893_s3] sm:$0xff] %vm1287_vm2, %v1271_v26 }
 0x219   :  { %v1320_v29 = vpop.trf.xlu0 }
 0x21a   :  { %1352 = vrot.lane.b32.xlu0 %v1320_v29, %s1767_s29 }
 0x21b   :  { %v1272_v1 = vpop.trf.xlu1 }
 0x21c   :  { %1289 = vst.msk [vmem:[%s2893_s3 + $0x8] sm:$0xff] %vm1287_vm2, %v1272_v1 }
 0x21d   :  { %v1321_v33 = vpop.trf.xlu0 }
 0x21e   :  { %1354 = vrot.lane.b32.xlu1 %v1321_v33, %s1767_s29 }
 0x21f   :  { %v1273_v55 = vpop.trf.xlu1 }
 0x220   :  { %1290 = vst.msk [vmem:[%s2893_s3 + $0x10] sm:$0xff] %vm1287_vm2, %v1273_v55 }
 0x221   :  { %v1322_v41 = vpop.trf.xlu0 }
 0x222   :  { %1356 = vrot.lane.b32.xlu1 %v1322_v41, %s1767_s29 }
 0x223   :  { %v1274_v2 = vpop.trf.xlu1 }
 0x224   :  { %1291 = vst.msk [vmem:[%s2893_s3 + $0x18] sm:$0xff] %vm1287_vm2, %v1274_v2 }
 0x225   :  { %v1323_v10 = vpop.trf.xlu0 }
 0x226   :  { %1358 = vrot.lane.b32.xlu0 %v1323_v10, %s1767_s29 }
 0x227   :  { %v1275_v19 = vpop.trf.xlu1 }
 0x228   :  { %1292 = vst.msk [vmem:[%s2893_s3 + $0x20] sm:$0xff] %vm1287_vm2, %v1275_v19 }
 0x229   :  { %v1324_v54 = vpop.trf.xlu0 }
 0x22a   :  { %1360 = vrot.lane.b32.xlu1 %v1324_v54, %s1767_s29 }
 0x22b   :  { %v1276_v50 = vpop.trf.xlu1 }
 0x22c   :  { %1293 = vst.msk [vmem:[%s2893_s3 + $0x28] sm:$0xff] %vm1287_vm2, %v1276_v50 }
 0x22d   :  { %v1325_v47 = vpop.trf.xlu0 }
 0x22e   :  { %1362 = vrot.lane.b32.xlu0 %v1325_v47, %s1767_s29 }
 0x22f   :  { %v1277_v11 = vpop.trf.xlu1 }
 0x230   :  { %1294 = vst.msk [vmem:[%s2893_s3 + $0x30] sm:$0xff] %vm1287_vm2, %v1277_v11 }
 0x231   :  { %v1326_v14 = vpop.trf.xlu0 }
 0x232   :  { %1364 = vrot.lane.b32.xlu1 %v1326_v14, %s1767_s29 }
 0x233   :  { %v1278_v44 = vpop.trf.xlu1 }
 0x234   :  { %1295 = vst.msk [vmem:[%s2893_s3 + $0x38] sm:$0xff] %vm1287_vm2, %v1278_v44 }
 0x235   :  { %v1327_v49 = vpop.trf.xlu0 }
 0x236   :  { %1366 = vrot.lane.b32.xlu0 %v1327_v49, %s1767_s29 }
 0x237   :  { %v1279_v16 = vpop.trf.xlu1 }
 0x238   :  { %1296 = vst.msk [vmem:[%s2893_s3 + $0x40] sm:$0xff] %vm1287_vm2, %v1279_v16 }
 0x239   :  { %v1328_v61 = vpop.trf.xlu0 }
 0x23a   :  { %1368 = vrot.lane.b32.xlu1 %v1328_v61, %s1767_s29 }
 0x23b   :  { %v1280_v27 = vpop.trf.xlu1 }
 0x23c   :  { %1297 = vst.msk [vmem:[%s2893_s3 + $0x48] sm:$0xff] %vm1287_vm2, %v1280_v27 }
 0x23d   :  { %v1329_v25 = vpop.trf.xlu0 }
 0x23e   :  { %1370 = vrot.lane.b32.xlu0 %v1329_v25, %s1767_s29 }
 0x23f   :  { %v1281_v43 = vpop.trf.xlu1 }
 0x240   :  { %1298 = vst.msk [vmem:[%s2893_s3 + $0x50] sm:$0xff] %vm1287_vm2, %v1281_v43 }
 0x241   :  { %v1330_v13 = vpop.trf.xlu0 }
 0x242   :  { %1372 = vrot.lane.b32.xlu1 %v1330_v13, %s1767_s29 }
 0x243   :  { %v1282_v9 = vpop.trf.xlu1 }
 0x244   :  { %1299 = vst.msk [vmem:[%s2893_s3 + $0x58] sm:$0xff] %vm1287_vm2, %v1282_v9 }
 0x245   :  { %v1331_v4 = vpop.trf.xlu0 }
 0x246   :  { %1374 = vrot.lane.b32.xlu0 %v1331_v4, %s1767_s29 }
 0x247   :  { %v1283_v6 = vpop.trf.xlu1 }
 0x248   :  { %1300 = vst.msk [vmem:[%s2893_s3 + $0x60] sm:$0xff] %vm1287_vm2, %v1283_v6 }
 0x249   :  { %v1332_v17 = vpop.trf.xlu0 }
 0x24a   :  { %1376 = vrot.lane.b32.xlu1 %v1332_v17, %s1767_s29 }
 0x24b   :  { %v1284_v62 = vpop.trf.xlu1 }
 0x24c   :  { %1301 = vst.msk [vmem:[%s2893_s3 + $0x68] sm:$0xff] %vm1287_vm2, %v1284_v62 }
 0x24d   :  { %v1333_v34 = vpop.trf.xlu0 }
 0x24e   :  { %1378 = vrot.lane.b32.xlu0 %v1333_v34, %s1767_s29 }
 0x24f   :  { %v1285_v46 = vpop.trf.xlu1 }
 0x250   :  { %1302 = vst.msk [vmem:[%s2893_s3 + $0x70] sm:$0xff] %vm1287_vm2, %v1285_v46 }
 0x251   :  { %v1334_v42 = vpop.trf.xlu0 }
 0x252   :  { %1380 = vrot.lane.b32.xlu1 %v1334_v42, %s1767_s29 }
 0x253   :  { %v1286_v45 = vpop.trf.xlu1 }
 0x254   :  { %1303 = vst.msk [vmem:[%s2893_s3 + $0x78] sm:$0xff] %vm1287_vm2, %v1286_v45 }
 0x255   :  { %v1335_v56 = vpop.trf.xlu0 }
 0x256   :  { %1382 = vrot.lane.b32.xlu0 %v1335_v56, %s1767_s29 }
 0x28c   :  { %v1353_v63 = vpop.permute.xlu0 %1352 }
 0x28d   :  { %1401 = vst.msk [vmem:[%s2893_s3] sm:$0xff] %vm1400_vm3, %v1353_v63 }
 0x290   :  { %v1355_v35 = vpop.permute.xlu1 %1354 }
 0x291   :  { %1402 = vst.msk [vmem:[%s2893_s3 + $0x8] sm:$0xff] %vm1400_vm3, %v1355_v35 }
 0x294   :  { %v1357_v51 = vpop.permute.xlu1 %1356 }
 0x295   :  { %1403 = vst.msk [vmem:[%s2893_s3 + $0x10] sm:$0xff] %vm1400_vm3, %v1357_v51 }
 0x298   :  { %v1359_v28 = vpop.permute.xlu0 %1358 }
 0x299   :  { %1404 = vst.msk [vmem:[%s2893_s3 + $0x18] sm:$0xff] %vm1400_vm3, %v1359_v28 }
 0x29c   :  { %v1361_v60 = vpop.permute.xlu1 %1360 }
 0x29d   :  { %1405 = vst.msk [vmem:[%s2893_s3 + $0x20] sm:$0xff] %vm1400_vm3, %v1361_v60 }
 0x2a0   :  { %v1363_v59 = vpop.permute.xlu0 %1362 }
 0x2a1   :  { %1406 = vst.msk [vmem:[%s2893_s3 + $0x28] sm:$0xff] %vm1400_vm3, %v1363_v59 }
 0x2a4   :  { %v1365_v48 = vpop.permute.xlu1 %1364 }
 0x2a5   :  { %1407 = vst.msk [vmem:[%s2893_s3 + $0x30] sm:$0xff] %vm1400_vm3, %v1365_v48 }
 0x2a8   :  { %v1367_v36 = vpop.permute.xlu0 %1366 }
 0x2a9   :  { %1408 = vst.msk [vmem:[%s2893_s3 + $0x38] sm:$0xff] %vm1400_vm3, %v1367_v36 }
 0x2ac   :  { %v1369_v38 = vpop.permute.xlu1 %1368 }
 0x2ad   :  { %1409 = vst.msk [vmem:[%s2893_s3 + $0x40] sm:$0xff] %vm1400_vm3, %v1369_v38 }
 0x2b0   :  { %v1371_v22 = vpop.permute.xlu0 %1370 }
 0x2b1   :  { %1410 = vst.msk [vmem:[%s2893_s3 + $0x48] sm:$0xff] %vm1400_vm3, %v1371_v22 }
 0x2b4   :  { %v1373_v18 = vpop.permute.xlu1 %1372 }
 0x2b5   :  { %1411 = vst.msk [vmem:[%s2893_s3 + $0x50] sm:$0xff] %vm1400_vm3, %v1373_v18 }
 0x2b8   :  { %v1375_v53 = vpop.permute.xlu0 %1374 }
 0x2b9   :  { %1412 = vst.msk [vmem:[%s2893_s3 + $0x58] sm:$0xff] %vm1400_vm3, %v1375_v53 }
 0x2bc   :  { %v1377_v0 = vpop.permute.xlu1 %1376 }
 0x2bd   :  { %1413 = vst.msk [vmem:[%s2893_s3 + $0x60] sm:$0xff] %vm1400_vm3, %v1377_v0 }
 0x2c0   :  { %v1379_v23 = vpop.permute.xlu0 %1378 }
 0x2c1   :  { %1414 = vst.msk [vmem:[%s2893_s3 + $0x68] sm:$0xff] %vm1400_vm3, %v1379_v23 }
 0x2c4   :  { %v1381_v52 = vpop.permute.xlu1 %1380 }
 0x2c5   :  { %1415 = vst.msk [vmem:[%s2893_s3 + $0x70] sm:$0xff] %vm1400_vm3, %v1381_v52 }
 0x2c8   :  { %v1383_v12 = vpop.permute.xlu0 %1382 }
 0x2c9   :  { %1416 = vst.msk [vmem:[%s2893_s3 + $0x78] sm:$0xff] %vm1400_vm3, %v1383_v12 }

</bundles_post_ra>
